<compile_context>
chip_gen: v6e
topology: v6e:2x2x1
jax: 0.10.0
libtpu: 0.0.40
codegen_flags: <defaults>
</compile_context>

<pallas_src>
import jax
import jax.numpy as jnp
from jax.experimental import pallas as pl
from jax.experimental.pallas import tpu as pltpu

# Small synthetic text-encoder config (CLIP-like).
B, S, D, H, F, L, VOCAB = 2, 8, 32, 4, 128, 2, 64
DH = D // H
LN_EPS = 1e-5
W_DTYPE = jnp.bfloat16        # weight-matrix / MXU operand dtype (f32 accumulate)


def _layer_norm(x, g, b):
    mu = jnp.mean(x, axis=-1, keepdims=True)
    var = jnp.mean((x - mu) ** 2, axis=-1, keepdims=True)
    return (x - mu) * jax.lax.rsqrt(var + LN_EPS) * g + b


def text_encoder_kernel(x_ref, bias_ref,
                        wqkv_ref, bqkv_ref, wo_ref, bo_ref,
                        g1_ref, b1_ref, g2_ref, b2_ref,
                        wf1_ref, bf1_ref, wf2_ref, bf2_ref,
                        gf_ref, bf_ref,
                        out_ref, h_ref):
    l = pl.program_id(1)                              # layer index (inner axis)

    @pl.when(l == 0)
    def _():                                          # load this sequence's rows
        h_ref[...] = x_ref[...]

    h = h_ref[...]                                    # (S, D) f32 hidden state

    # ---- multi-head causal self-attention (all heads fused) -----------------
    hn = _layer_norm(h, g1_ref[...], b1_ref[...])
    # Fused QKV: one (S, D) @ (D, 3D) bf16 matmul, f32 accumulate, fused bias.
    qkv = jnp.dot(hn.astype(W_DTYPE), wqkv_ref[...],
                  preferred_element_type=jnp.float32) + bqkv_ref[...]
    # Head-major layout via layout-aware transpose (no per-head Python loop).
    q = pltpu.einshape("shd->hsd", qkv[:, :D].reshape(S, H, DH))        # (H,S,DH)
    k = pltpu.einshape("shd->hsd", qkv[:, D:2 * D].reshape(S, H, DH))
    v = pltpu.einshape("shd->hsd", qkv[:, 2 * D:].reshape(S, H, DH))

    # Scores for all heads in one batched einsum (1/sqrt(DH) pre-folded into Q).
    sc = jnp.einsum('hqd,hkd->hqk', q.astype(W_DTYPE), k.astype(W_DTYPE),
                    preferred_element_type=jnp.float32)                 # (H,S,S)
    sc = sc + bias_ref[...][None, :, :]               # causal + key-padding bias
    m = jnp.max(sc, axis=-1, keepdims=True)           # softmax kept in f32
    p = jnp.exp(sc - m)
    p = p * pl.reciprocal(jnp.sum(p, axis=-1, keepdims=True), approx=True)
    ctx = jnp.einsum('hqk,hkd->hqd', p.astype(W_DTYPE), v.astype(W_DTYPE),
                     preferred_element_type=jnp.float32)                # (H,S,DH)
    ctx = pltpu.einshape("hqd->qhd", ctx).reshape(S, D)
    h = h + jnp.dot(ctx.astype(W_DTYPE), wo_ref[...],
                    preferred_element_type=jnp.float32) + bo_ref[...]

    # ---- MLP (quick-GELU, as in CLIP) ----------------------------------------
    hn2 = _layer_norm(h, g2_ref[...], b2_ref[...])
    a = jnp.dot(hn2.astype(W_DTYPE), wf1_ref[...],
                preferred_element_type=jnp.float32) + bf1_ref[...]
    a = a * jax.nn.sigmoid(1.702 * a)                 # quick-GELU (f32)
    h = h + jnp.dot(a.astype(W_DTYPE), wf2_ref[...],
                    preferred_element_type=jnp.float32) + bf2_ref[...]
    h_ref[...] = h

    @pl.when(l == L - 1)
    def _():                                          # final LayerNorm + store
        out_ref[...] = _layer_norm(h, gf_ref[...], bf_ref[...])


def encode_text(params, input_ids, attention_mask):
    """Pallas equivalent of encode_prompt(text_encoder, input_ids, attention_mask)."""
    # Glue: embedding gather + positional embedding (not the hot path).
    x = (params["tok_emb"][input_ids] + params["pos_emb"][None, :S, :]).astype(jnp.float32)
    x = x.reshape(B * S, D)                           # lane-friendly row slab

    # Glue: additive attention bias (causal + key-padding mask).
    causal = jnp.arange(S)[None, :] <= jnp.arange(S)[:, None]            # (S, S)
    keep = causal[None, :, :] & (attention_mask[:, None, :] > 0)         # (B, S, S)
    bias = jnp.where(keep, 0.0, -1e9).astype(jnp.float32)

    # Fuse QKV weights/biases once; fold the 1/sqrt(DH) scale into Q columns.
    scale = 1.0 / (DH ** 0.5)
    wqkv = jnp.concatenate([params["wq"] * scale, params["wk"], params["wv"]],
                           axis=-1).astype(W_DTYPE)                      # (L, D, 3D)
    bqkv = jnp.concatenate([params["bq"] * scale, params["bk"], params["bv"]],
                           axis=-1).astype(jnp.float32)                  # (L, 1, 3D)
    wo = params["wo"].astype(W_DTYPE)
    wf1 = params["wf1"].astype(W_DTYPE)
    wf2 = params["wf2"].astype(W_DTYPE)

    operands = (x, bias, wqkv, bqkv, wo, params["bo"],
                params["ln1_g"], params["ln1_b"], params["ln2_g"], params["ln2_b"],
                wf1, params["bf1"], wf2, params["bf2"],
                params["lnf_g"], params["lnf_b"])

    def layer_spec(arr):
        """Per-layer weight block: stream layer l, leading dim squeezed."""
        zeros = (0,) * (arr.ndim - 1)
        return pl.BlockSpec((None,) + arr.shape[1:], lambda b, l, _z=zeros: (l,) + _z)

    in_specs = [
        pl.BlockSpec((S, D), lambda b, l: (b, 0)),             # x rows of sequence b
        pl.BlockSpec((None, S, S), lambda b, l: (b, 0, 0)),    # bias of sequence b
        layer_spec(wqkv), layer_spec(bqkv), layer_spec(wo), layer_spec(params["bo"]),
        layer_spec(params["ln1_g"]), layer_spec(params["ln1_b"]),
        layer_spec(params["ln2_g"]), layer_spec(params["ln2_b"]),
        layer_spec(wf1), layer_spec(params["bf1"]),
        layer_spec(wf2), layer_spec(params["bf2"]),
        pl.BlockSpec((1, D), lambda b, l: (0, 0)),             # final LN gamma
        pl.BlockSpec((1, D), lambda b, l: (0, 0)),             # final LN beta
    ]
    out_spec = pl.BlockSpec((S, D), lambda b, l: (b, 0))

    flops = int(2 * L * B * S * (D * 3 * D + D * D + 2 * D * F)
                + 2 * L * B * H * 2 * S * S * DH)
    transcendentals = int(L * B * (H * S * S + S * F))
    bytes_accessed = int(sum(int(o.size) * o.dtype.itemsize for o in operands)
                         + 4 * B * S * D)

    out = pl.pallas_call(
        text_encoder_kernel,
        out_shape=jax.ShapeDtypeStruct((B * S, D), jnp.float32),
        grid_spec=pltpu.PrefetchScalarGridSpec(
            num_scalar_prefetch=0,
            grid=(B, L),                              # sequences outer, layers inner
            in_specs=in_specs,
            out_specs=out_spec,
            scratch_shapes=[pltpu.VMEM((S, D), jnp.float32)],   # hidden-state carry
        ),
        compiler_params=pltpu.CompilerParams(
            dimension_semantics=("parallel", "arbitrary"),       # megacore on seqs
            vmem_limit_bytes=48 * 1024 * 1024),                  # fits v7x 64 MiB
        cost_estimate=pl.CostEstimate(flops=flops,
                                      transcendentals=transcendentals,
                                      bytes_accessed=bytes_accessed),
    )(*operands)
    return out.reshape(B, S, D)                       # free layout op in XLA


def init_params(key):
    ks = jax.random.split(key, 10)
    s = 0.02
    return {
        "tok_emb": s * jax.random.normal(ks[0], (VOCAB, D), jnp.float32),
        "pos_emb": s * jax.random.normal(ks[1], (S, D), jnp.float32),
        "wq": s * jax.random.normal(ks[2], (L, D, D), jnp.float32),
        "bq": jnp.zeros((L, 1, D), jnp.float32),
        "wk": s * jax.random.normal(ks[3], (L, D, D), jnp.float32),
        "bk": jnp.zeros((L, 1, D), jnp.float32),
        "wv": s * jax.random.normal(ks[4], (L, D, D), jnp.float32),
        "bv": jnp.zeros((L, 1, D), jnp.float32),
        "wo": s * jax.random.normal(ks[5], (L, D, D), jnp.float32),
        "bo": jnp.zeros((L, 1, D), jnp.float32),
        "ln1_g": jnp.ones((L, 1, D), jnp.float32),
        "ln1_b": jnp.zeros((L, 1, D), jnp.float32),
        "ln2_g": jnp.ones((L, 1, D), jnp.float32),
        "ln2_b": jnp.zeros((L, 1, D), jnp.float32),
        "wf1": s * jax.random.normal(ks[6], (L, D, F), jnp.float32),
        "bf1": jnp.zeros((L, 1, F), jnp.float32),
        "wf2": s * jax.random.normal(ks[7], (L, F, D), jnp.float32),
        "bf2": jnp.zeros((L, 1, D), jnp.float32),
        "lnf_g": jnp.ones((1, D), jnp.float32),
        "lnf_b": jnp.zeros((1, D), jnp.float32),
    }


# TODO(synk): PIL image pasting, LLaVA next-prompt prediction and HF tokenization
# from TP_text_wrapper.forward have no TPU/Pallas equivalent; only the text
# encoder (encode_prompt path) is implemented as a kernel.

if __name__ == "__main__":
    key = jax.random.PRNGKey(0)
    pkey, ikey = jax.random.split(key)
    params = init_params(pkey)

    # Synthetic "tokenized prompt": random token ids + padding mask.
    input_ids = jax.random.randint(ikey, (B, S), 0, VOCAB, dtype=jnp.int32)
    attention_mask = jnp.array(
        [[1] * S, [1] * (S - 3) + [0] * 3], dtype=jnp.int32)

    text_embeddings = encode_text(params, input_ids, attention_mask)
    jax.block_until_ready(text_embeddings)
    assert text_embeddings.shape == (B, S, D)
    print("KERNEL_OK")
</pallas_src>

<mosaic_0001>
module attributes {stable_mosaic.version = 11 : i64} {
  func.func @text_encoder_kernel(%arg0: i32, %arg1: i32, %arg2: memref<8x32xf32, #tpu.memory_space<vmem>>, %arg3: memref<1x8x8xf32, #tpu.memory_space<vmem>>, %arg4: memref<1x32x96xbf16, #tpu.memory_space<vmem>>, %arg5: memref<1x1x96xf32, #tpu.memory_space<vmem>>, %arg6: memref<1x32x32xbf16, #tpu.memory_space<vmem>>, %arg7: memref<1x1x32xf32, #tpu.memory_space<vmem>>, %arg8: memref<1x1x32xf32, #tpu.memory_space<vmem>>, %arg9: memref<1x1x32xf32, #tpu.memory_space<vmem>>, %arg10: memref<1x1x32xf32, #tpu.memory_space<vmem>>, %arg11: memref<1x1x32xf32, #tpu.memory_space<vmem>>, %arg12: memref<1x32x128xbf16, #tpu.memory_space<vmem>>, %arg13: memref<1x1x128xf32, #tpu.memory_space<vmem>>, %arg14: memref<1x128x32xbf16, #tpu.memory_space<vmem>>, %arg15: memref<1x1x32xf32, #tpu.memory_space<vmem>>, %arg16: memref<1x32xf32, #tpu.memory_space<vmem>>, %arg17: memref<1x32xf32, #tpu.memory_space<vmem>>, %arg18: memref<8x32xf32, #tpu.memory_space<vmem>>, %arg19: memref<8x32xf32, #tpu.memory_space<vmem>>) attributes {dimension_semantics = [#tpu.dimension_semantics<parallel>, #tpu.dimension_semantics<arbitrary>], iteration_bounds = array<i64: 2, 2>, scalar_prefetch = 0 : i64, scratch_operands = 1 : i64, tpu.core_type = #tpu.core_type<tc>, window_params = [{transform_indices = @transform_0, window_bounds = array<i64: 8, 32>}, {transform_indices = @transform_1, window_bounds = array<i64: 1, 8, 8>}, {transform_indices = @transform_2, window_bounds = array<i64: 1, 32, 96>}, {transform_indices = @transform_3, window_bounds = array<i64: 1, 1, 96>}, {transform_indices = @transform_4, window_bounds = array<i64: 1, 32, 32>}, {transform_indices = @transform_5, window_bounds = array<i64: 1, 1, 32>}, {transform_indices = @transform_6, window_bounds = array<i64: 1, 1, 32>}, {transform_indices = @transform_7, window_bounds = array<i64: 1, 1, 32>}, {transform_indices = @transform_8, window_bounds = array<i64: 1, 1, 32>}, {transform_indices = @transform_9, window_bounds = array<i64: 1, 1, 32>}, {transform_indices = @transform_10, window_bounds = array<i64: 1, 32, 128>}, {transform_indices = @transform_11, window_bounds = array<i64: 1, 1, 128>}, {transform_indices = @transform_12, window_bounds = array<i64: 1, 128, 32>}, {transform_indices = @transform_13, window_bounds = array<i64: 1, 1, 32>}, {pipeline_mode = #tpu.pipeline_mode<synchronous>, transform_indices = @transform_14, window_bounds = array<i64: 1, 32>}, {pipeline_mode = #tpu.pipeline_mode<synchronous>, transform_indices = @transform_15, window_bounds = array<i64: 1, 32>}, {transform_indices = @transform_16, window_bounds = array<i64: 8, 32>}]} {
    %c0_i32 = arith.constant 0 : i32
    %0 = arith.cmpi eq, %arg1, %c0_i32 : i32
    %1 = arith.extui %0 : i1 to i32
    %c0_i32_0 = arith.constant 0 : i32
    %2 = arith.cmpi ne, %1, %c0_i32_0 : i32
    scf.if %2 {
      %c0_63 = arith.constant 0 : index
      %c0_64 = arith.constant 0 : index
      %134 = vector.load %arg2[%c0_63, %c0_64] : memref<8x32xf32, #tpu.memory_space<vmem>>, vector<8x32xf32>
      %c0_65 = arith.constant 0 : index
      %c0_66 = arith.constant 0 : index
      %135 = vector.load %arg19[%c0_65, %c0_66] : memref<8x32xf32, #tpu.memory_space<vmem>>, vector<8x32xf32>
      tpu.vector_store %arg19[%c0_65, %c0_66], %134 {strides = array<i32>} : memref<8x32xf32, #tpu.memory_space<vmem>>, vector<8x32xf32>,
    } else {
    }
    %c0 = arith.constant 0 : index
    %c0_1 = arith.constant 0 : index
    %3 = vector.load %arg19[%c0, %c0_1] : memref<8x32xf32, #tpu.memory_space<vmem>>, vector<8x32xf32>
    %c0_2 = arith.constant 0 : index
    %c0_3 = arith.constant 0 : index
    %c0_4 = arith.constant 0 : index
    %4 = vector.load %arg8[%c0_2, %c0_3, %c0_4] : memref<1x1x32xf32, #tpu.memory_space<vmem>>, vector<1x1x32xf32>
    %5 = vector.shape_cast %4 : vector<1x1x32xf32> to vector<1x32xf32>
    %c0_5 = arith.constant 0 : index
    %c0_6 = arith.constant 0 : index
    %c0_7 = arith.constant 0 : index
    %6 = vector.load %arg9[%c0_5, %c0_6, %c0_7] : memref<1x1x32xf32, #tpu.memory_space<vmem>>, vector<1x1x32xf32>
    %7 = vector.shape_cast %6 : vector<1x1x32xf32> to vector<1x32xf32>
    %cst = arith.constant dense<0.000000e+00> : vector<8xf32>
    %8 = vector.multi_reduction <add>, %3, %cst [1] : vector<8x32xf32> to vector<8xf32>
    %9 = vector.shape_cast %8 : vector<8xf32> to vector<8x1xf32>
    %cst_8 = arith.constant 3.200000e+01 : f32
    %10 = vector.broadcast %cst_8 : f32 to vector<8x1xf32>
    %11 = arith.divf %9, %10 : vector<8x1xf32>
    %12 = vector.broadcast %11 : vector<8x1xf32> to vector<8x32xf32>
    %13 = arith.subf %3, %12 : vector<8x32xf32>
    %14 = arith.mulf %13, %13 : vector<8x32xf32>
    %cst_9 = arith.constant dense<0.000000e+00> : vector<8xf32>
    %15 = vector.multi_reduction <add>, %14, %cst_9 [1] : vector<8x32xf32> to vector<8xf32>
    %16 = vector.shape_cast %15 : vector<8xf32> to vector<8x1xf32>
    %cst_10 = arith.constant 3.200000e+01 : f32
    %17 = vector.broadcast %cst_10 : f32 to vector<8x1xf32>
    %18 = arith.divf %16, %17 : vector<8x1xf32>
    %19 = vector.broadcast %11 : vector<8x1xf32> to vector<8x32xf32>
    %20 = arith.subf %3, %19 : vector<8x32xf32>
    %cst_11 = arith.constant 9.99999974E-6 : f32
    %21 = vector.broadcast %cst_11 : f32 to vector<8x1xf32>
    %22 = arith.addf %18, %21 : vector<8x1xf32>
    %23 = math.rsqrt %22 : vector<8x1xf32>
    %24 = vector.broadcast %23 : vector<8x1xf32> to vector<8x32xf32>
    %25 = arith.mulf %20, %24 : vector<8x32xf32>
    %26 = vector.broadcast %5 : vector<1x32xf32> to vector<8x32xf32>
    %27 = arith.mulf %25, %26 : vector<8x32xf32>
    %28 = vector.broadcast %7 : vector<1x32xf32> to vector<8x32xf32>
    %29 = arith.addf %27, %28 : vector<8x32xf32>
    %30 = arith.truncf %29 : vector<8x32xf32> to vector<8x32xbf16>
    %c0_12 = arith.constant 0 : index
    %c0_13 = arith.constant 0 : index
    %c0_14 = arith.constant 0 : index
    %31 = vector.load %arg4[%c0_12, %c0_13, %c0_14] : memref<1x32x96xbf16, #tpu.memory_space<vmem>>, vector<1x32x96xbf16>
    %32 = vector.shape_cast %31 : vector<1x32x96xbf16> to vector<32x96xbf16>
    %cst_15 = arith.constant dense<0.000000e+00> : vector<8x96xf32>
    %33 = tpu.matmul %30, %32, %cst_15 {dimension_numbers = #tpu.dot_dimension_numbers<[1], [0], [0], [1], [0, 0, 1, 1], [], []>} : vector<8x32xbf16>, vector<32x96xbf16>, vector<8x96xf32> -> vector<8x96xf32>
    %c0_16 = arith.constant 0 : index
    %c0_17 = arith.constant 0 : index
    %c0_18 = arith.constant 0 : index
    %34 = vector.load %arg5[%c0_16, %c0_17, %c0_18] : memref<1x1x96xf32, #tpu.memory_space<vmem>>, vector<1x1x96xf32>
    %35 = vector.shape_cast %34 : vector<1x1x96xf32> to vector<1x96xf32>
    %36 = vector.broadcast %35 : vector<1x96xf32> to vector<8x96xf32>
    %37 = arith.addf %33, %36 : vector<8x96xf32>
    %38 = vector.extract_strided_slice %37 {offsets = [0, 0], sizes = [8, 32], strides = [1, 1]} : vector<8x96xf32> to vector<8x32xf32>
    %39 = vector.shape_cast %38 : vector<8x32xf32> to vector<8x4x8xf32>
    %40 = tpu.transpose %39, [1, 0, 2] : vector<8x4x8xf32> -> vector<4x8x8xf32>
    %41 = vector.extract_strided_slice %37 {offsets = [0, 32], sizes = [8, 32], strides = [1, 1]} : vector<8x96xf32> to vector<8x32xf32>
    %42 = vector.shape_cast %41 : vector<8x32xf32> to vector<8x4x8xf32>
    %43 = tpu.transpose %42, [1, 0, 2] : vector<8x4x8xf32> -> vector<4x8x8xf32>
    %44 = vector.extract_strided_slice %37 {offsets = [0, 64], sizes = [8, 32], strides = [1, 1]} : vector<8x96xf32> to vector<8x32xf32>
    %45 = vector.shape_cast %44 : vector<8x32xf32> to vector<8x4x8xf32>
    %46 = tpu.transpose %45, [1, 0, 2] : vector<8x4x8xf32> -> vector<4x8x8xf32>
    %47 = arith.truncf %40 : vector<4x8x8xf32> to vector<4x8x8xbf16>
    %48 = arith.truncf %43 : vector<4x8x8xf32> to vector<4x8x8xbf16>
    "tpu.trace_start"() <{level = 10 : i32, message = "hqd,hkd->hqk"}> : () -> ()
    %cst_19 = arith.constant dense<0.000000e+00> : vector<4x8x8xf32>
    %49 = tpu.matmul %47, %48, %cst_19 {dimension_numbers = #tpu.dot_dimension_numbers<[2], [2], [1], [1], [0, 0, 0, 1, 1, 1], [0], [0]>} : vector<4x8x8xbf16>, vector<4x8x8xbf16>, vector<4x8x8xf32> -> vector<4x8x8xf32>
    "tpu.trace_stop"() : () -> ()
    %c0_20 = arith.constant 0 : index
    %c0_21 = arith.constant 0 : index
    %c0_22 = arith.constant 0 : index
    %50 = vector.load %arg3[%c0_20, %c0_21, %c0_22] : memref<1x8x8xf32, #tpu.memory_space<vmem>>, vector<1x8x8xf32>
    %51 = vector.shape_cast %50 : vector<1x8x8xf32> to vector<8x8xf32>
    %52 = vector.shape_cast %51 : vector<8x8xf32> to vector<1x8x8xf32>
    %53 = vector.broadcast %52 : vector<1x8x8xf32> to vector<4x8x8xf32>
    %54 = arith.addf %49, %53 : vector<4x8x8xf32>
    %cst_23 = arith.constant dense<0xFF800000> : vector<4x8xf32>
    %55 = vector.multi_reduction <maximumf>, %54, %cst_23 [2] : vector<4x8x8xf32> to vector<4x8xf32>
    %56 = vector.shape_cast %55 : vector<4x8xf32> to vector<4x8x1xf32>
    %57 = vector.broadcast %56 : vector<4x8x1xf32> to vector<4x8x8xf32>
    %58 = arith.subf %54, %57 : vector<4x8x8xf32>
    %59 = math.exp %58 : vector<4x8x8xf32>
    %cst_24 = arith.constant dense<0.000000e+00> : vector<4x8xf32>
    %60 = vector.multi_reduction <add>, %59, %cst_24 [2] : vector<4x8x8xf32> to vector<4x8xf32>
    %61 = vector.shape_cast %60 : vector<4x8xf32> to vector<4x8x1xf32>
    %62 = tpu.reciprocal %61 {approx = true} : vector<4x8x1xf32> -> vector<4x8x1xf32>
    %63 = vector.broadcast %62 : vector<4x8x1xf32> to vector<4x8x8xf32>
    %64 = arith.mulf %59, %63 : vector<4x8x8xf32>
    %65 = arith.truncf %64 : vector<4x8x8xf32> to vector<4x8x8xbf16>
    %66 = arith.truncf %46 : vector<4x8x8xf32> to vector<4x8x8xbf16>
    "tpu.trace_start"() <{level = 10 : i32, message = "hqk,hkd->hqd"}> : () -> ()
    %cst_25 = arith.constant dense<0.000000e+00> : vector<4x8x8xf32>
    %67 = tpu.matmul %65, %66, %cst_25 {dimension_numbers = #tpu.dot_dimension_numbers<[2], [1], [1], [2], [0, 0, 0, 1, 1, 2], [0], [0]>} : vector<4x8x8xbf16>, vector<4x8x8xbf16>, vector<4x8x8xf32> -> vector<4x8x8xf32>
    "tpu.trace_stop"() : () -> ()
    %68 = tpu.transpose %67, [1, 0, 2] : vector<4x8x8xf32> -> vector<8x4x8xf32>
    %69 = vector.shape_cast %68 : vector<8x4x8xf32> to vector<8x32xf32>
    %70 = arith.truncf %69 : vector<8x32xf32> to vector<8x32xbf16>
    %c0_26 = arith.constant 0 : index
    %c0_27 = arith.constant 0 : index
    %c0_28 = arith.constant 0 : index
    %71 = vector.load %arg6[%c0_26, %c0_27, %c0_28] : memref<1x32x32xbf16, #tpu.memory_space<vmem>>, vector<1x32x32xbf16>
    %72 = vector.shape_cast %71 : vector<1x32x32xbf16> to vector<32x32xbf16>
    %cst_29 = arith.constant dense<0.000000e+00> : vector<8x32xf32>
    %73 = tpu.matmul %70, %72, %cst_29 {dimension_numbers = #tpu.dot_dimension_numbers<[1], [0], [0], [1], [0, 0, 1, 1], [], []>} : vector<8x32xbf16>, vector<32x32xbf16>, vector<8x32xf32> -> vector<8x32xf32>
    %74 = arith.addf %3, %73 : vector<8x32xf32>
    %c0_30 = arith.constant 0 : index
    %c0_31 = arith.constant 0 : index
    %c0_32 = arith.constant 0 : index
    %75 = vector.load %arg7[%c0_30, %c0_31, %c0_32] : memref<1x1x32xf32, #tpu.memory_space<vmem>>, vector<1x1x32xf32>
    %76 = vector.shape_cast %75 : vector<1x1x32xf32> to vector<1x32xf32>
    %77 = vector.broadcast %76 : vector<1x32xf32> to vector<8x32xf32>
    %78 = arith.addf %74, %77 : vector<8x32xf32>
    %c0_33 = arith.constant 0 : index
    %c0_34 = arith.constant 0 : index
    %c0_35 = arith.constant 0 : index
    %79 = vector.load %arg10[%c0_33, %c0_34, %c0_35] : memref<1x1x32xf32, #tpu.memory_space<vmem>>, vector<1x1x32xf32>
    %80 = vector.shape_cast %79 : vector<1x1x32xf32> to vector<1x32xf32>
    %c0_36 = arith.constant 0 : index
    %c0_37 = arith.constant 0 : index
    %c0_38 = arith.constant 0 : index
    %81 = vector.load %arg11[%c0_36, %c0_37, %c0_38] : memref<1x1x32xf32, #tpu.memory_space<vmem>>, vector<1x1x32xf32>
    %82 = vector.shape_cast %81 : vector<1x1x32xf32> to vector<1x32xf32>
    %cst_39 = arith.constant dense<0.000000e+00> : vector<8xf32>
    %83 = vector.multi_reduction <add>, %78, %cst_39 [1] : vector<8x32xf32> to vector<8xf32>
    %84 = vector.shape_cast %83 : vector<8xf32> to vector<8x1xf32>
    %cst_40 = arith.constant 3.200000e+01 : f32
    %85 = vector.broadcast %cst_40 : f32 to vector<8x1xf32>
    %86 = arith.divf %84, %85 : vector<8x1xf32>
    %87 = vector.broadcast %86 : vector<8x1xf32> to vector<8x32xf32>
    %88 = arith.subf %78, %87 : vector<8x32xf32>
    %89 = arith.mulf %88, %88 : vector<8x32xf32>
    %cst_41 = arith.constant dense<0.000000e+00> : vector<8xf32>
    %90 = vector.multi_reduction <add>, %89, %cst_41 [1] : vector<8x32xf32> to vector<8xf32>
    %91 = vector.shape_cast %90 : vector<8xf32> to vector<8x1xf32>
    %cst_42 = arith.constant 3.200000e+01 : f32
    %92 = vector.broadcast %cst_42 : f32 to vector<8x1xf32>
    %93 = arith.divf %91, %92 : vector<8x1xf32>
    %94 = vector.broadcast %86 : vector<8x1xf32> to vector<8x32xf32>
    %95 = arith.subf %78, %94 : vector<8x32xf32>
    %cst_43 = arith.constant 9.99999974E-6 : f32
    %96 = vector.broadcast %cst_43 : f32 to vector<8x1xf32>
    %97 = arith.addf %93, %96 : vector<8x1xf32>
    %98 = math.rsqrt %97 : vector<8x1xf32>
    %99 = vector.broadcast %98 : vector<8x1xf32> to vector<8x32xf32>
    %100 = arith.mulf %95, %99 : vector<8x32xf32>
    %101 = vector.broadcast %80 : vector<1x32xf32> to vector<8x32xf32>
    %102 = arith.mulf %100, %101 : vector<8x32xf32>
    %103 = vector.broadcast %82 : vector<1x32xf32> to vector<8x32xf32>
    %104 = arith.addf %102, %103 : vector<8x32xf32>
    %105 = arith.truncf %104 : vector<8x32xf32> to vector<8x32xbf16>
    %c0_44 = arith.constant 0 : index
    %c0_45 = arith.constant 0 : index
    %c0_46 = arith.constant 0 : index
    %106 = vector.load %arg12[%c0_44, %c0_45, %c0_46] : memref<1x32x128xbf16, #tpu.memory_space<vmem>>, vector<1x32x128xbf16>
    %107 = vector.shape_cast %106 : vector<1x32x128xbf16> to vector<32x128xbf16>
    %cst_47 = arith.constant dense<0.000000e+00> : vector<8x128xf32>
    %108 = tpu.matmul %105, %107, %cst_47 {dimension_numbers = #tpu.dot_dimension_numbers<[1], [0], [0], [1], [0, 0, 1, 1], [], []>} : vector<8x32xbf16>, vector<32x128xbf16>, vector<8x128xf32> -> vector<8x128xf32>
    %c0_48 = arith.constant 0 : index
    %c0_49 = arith.constant 0 : index
    %c0_50 = arith.constant 0 : index
    %109 = vector.load %arg13[%c0_48, %c0_49, %c0_50] : memref<1x1x128xf32, #tpu.memory_space<vmem>>, vector<1x1x128xf32>
    %110 = vector.shape_cast %109 : vector<1x1x128xf32> to vector<1x128xf32>
    %111 = vector.broadcast %110 : vector<1x128xf32> to vector<8x128xf32>
    %112 = arith.addf %108, %111 : vector<8x128xf32>
    %cst_51 = arith.constant 1.702000e+00 : f32
    %113 = vector.broadcast %cst_51 : f32 to vector<8x128xf32>
    %114 = arith.mulf %113, %112 : vector<8x128xf32>
    %115 = arith.negf %114 : vector<8x128xf32>
    %116 = math.exp %115 : vector<8x128xf32>
    %cst_52 = arith.constant 1.000000e+00 : f32
    %117 = vector.broadcast %cst_52 : f32 to vector<8x128xf32>
    %118 = arith.addf %117, %116 : vector<8x128xf32>
    %119 = arith.divf %117, %118 : vector<8x128xf32>
    %120 = arith.mulf %112, %119 : vector<8x128xf32>
    %121 = arith.truncf %120 : vector<8x128xf32> to vector<8x128xbf16>
    %c0_53 = arith.constant 0 : index
    %c0_54 = arith.constant 0 : index
    %c0_55 = arith.constant 0 : index
    %122 = vector.load %arg14[%c0_53, %c0_54, %c0_55] : memref<1x128x32xbf16, #tpu.memory_space<vmem>>, vector<1x128x32xbf16>
    %123 = vector.shape_cast %122 : vector<1x128x32xbf16> to vector<128x32xbf16>
    %cst_56 = arith.constant dense<0.000000e+00> : vector<8x32xf32>
    %124 = tpu.matmul %121, %123, %cst_56 {dimension_numbers = #tpu.dot_dimension_numbers<[1], [0], [0], [1], [0, 0, 1, 1], [], []>} : vector<8x128xbf16>, vector<128x32xbf16>, vector<8x32xf32> -> vector<8x32xf32>
    %125 = arith.addf %78, %124 : vector<8x32xf32>
    %c0_57 = arith.constant 0 : index
    %c0_58 = arith.constant 0 : index
    %c0_59 = arith.constant 0 : index
    %126 = vector.load %arg15[%c0_57, %c0_58, %c0_59] : memref<1x1x32xf32, #tpu.memory_space<vmem>>, vector<1x1x32xf32>
    %127 = vector.shape_cast %126 : vector<1x1x32xf32> to vector<1x32xf32>
    %128 = vector.broadcast %127 : vector<1x32xf32> to vector<8x32xf32>
    %129 = arith.addf %125, %128 : vector<8x32xf32>
    %c0_60 = arith.constant 0 : index
    %c0_61 = arith.constant 0 : index
    %130 = vector.load %arg19[%c0_60, %c0_61] : memref<8x32xf32, #tpu.memory_space<vmem>>, vector<8x32xf32>
    tpu.vector_store %arg19[%c0_60, %c0_61], %129 {strides = array<i32>} : memref<8x32xf32, #tpu.memory_space<vmem>>, vector<8x32xf32>,
    %c1_i32 = arith.constant 1 : i32
    %131 = arith.cmpi eq, %arg1, %c1_i32 : i32
    %132 = arith.extui %131 : i1 to i32
    %c0_i32_62 = arith.constant 0 : i32
    %133 = arith.cmpi ne, %132, %c0_i32_62 : i32
    scf.if %133 {
      %c0_63 = arith.constant 0 : index
      %c0_64 = arith.constant 0 : index
      %134 = vector.load %arg16[%c0_63, %c0_64] : memref<1x32xf32, #tpu.memory_space<vmem>>, vector<1x32xf32>
      %c0_65 = arith.constant 0 : index
      %c0_66 = arith.constant 0 : index
      %135 = vector.load %arg17[%c0_65, %c0_66] : memref<1x32xf32, #tpu.memory_space<vmem>>, vector<1x32xf32>
      %cst_67 = arith.constant dense<0.000000e+00> : vector<8xf32>
      %136 = vector.multi_reduction <add>, %129, %cst_67 [1] : vector<8x32xf32> to vector<8xf32>
      %137 = vector.shape_cast %136 : vector<8xf32> to vector<8x1xf32>
      %cst_68 = arith.constant 3.200000e+01 : f32
      %138 = vector.broadcast %cst_68 : f32 to vector<8x1xf32>
      %139 = arith.divf %137, %138 : vector<8x1xf32>
      %140 = vector.broadcast %139 : vector<8x1xf32> to vector<8x32xf32>
      %141 = arith.subf %129, %140 : vector<8x32xf32>
      %142 = arith.mulf %141, %141 : vector<8x32xf32>
      %cst_69 = arith.constant dense<0.000000e+00> : vector<8xf32>
      %143 = vector.multi_reduction <add>, %142, %cst_69 [1] : vector<8x32xf32> to vector<8xf32>
      %144 = vector.shape_cast %143 : vector<8xf32> to vector<8x1xf32>
      %cst_70 = arith.constant 3.200000e+01 : f32
      %145 = vector.broadcast %cst_70 : f32 to vector<8x1xf32>
      %146 = arith.divf %144, %145 : vector<8x1xf32>
      %147 = vector.broadcast %139 : vector<8x1xf32> to vector<8x32xf32>
      %148 = arith.subf %129, %147 : vector<8x32xf32>
      %cst_71 = arith.constant 9.99999974E-6 : f32
      %149 = vector.broadcast %cst_71 : f32 to vector<8x1xf32>
      %150 = arith.addf %146, %149 : vector<8x1xf32>
      %151 = math.rsqrt %150 : vector<8x1xf32>
      %152 = vector.broadcast %151 : vector<8x1xf32> to vector<8x32xf32>
      %153 = arith.mulf %148, %152 : vector<8x32xf32>
      %154 = vector.broadcast %134 : vector<1x32xf32> to vector<8x32xf32>
      %155 = arith.mulf %153, %154 : vector<8x32xf32>
      %156 = vector.broadcast %135 : vector<1x32xf32> to vector<8x32xf32>
      %157 = arith.addf %155, %156 : vector<8x32xf32>
      %c0_72 = arith.constant 0 : index
      %c0_73 = arith.constant 0 : index
      %158 = vector.load %arg18[%c0_72, %c0_73] : memref<8x32xf32, #tpu.memory_space<vmem>>, vector<8x32xf32>
      tpu.vector_store %arg18[%c0_72, %c0_73], %157 {strides = array<i32>} : memref<8x32xf32, #tpu.memory_space<vmem>>, vector<8x32xf32>,
    } else {
    }
    return
  }
  func.func @transform_0(%arg0: i32, %arg1: i32) -> (i32, i32) {
    %c0_i32 = arith.constant 0 : i32
    %c0_i32_0 = arith.constant 0 : i32
    return %arg0, %c0_i32 : i32, i32
  }
  func.func @transform_1(%arg0: i32, %arg1: i32) -> (i32, i32, i32) {
    %c0_i32 = arith.constant 0 : i32
    %c0_i32_0 = arith.constant 0 : i32
    %c0_i32_1 = arith.constant 0 : i32
    return %arg0, %c0_i32, %c0_i32_0 : i32, i32, i32
  }
  func.func @transform_2(%arg0: i32, %arg1: i32) -> (i32, i32, i32) {
    %c0_i32 = arith.constant 0 : i32
    %c0_i32_0 = arith.constant 0 : i32
    %c0_i32_1 = arith.constant 0 : i32
    return %arg1, %c0_i32, %c0_i32_0 : i32, i32, i32
  }
  func.func @transform_3(%arg0: i32, %arg1: i32) -> (i32, i32, i32) {
    %c0_i32 = arith.constant 0 : i32
    %c0_i32_0 = arith.constant 0 : i32
    %c0_i32_1 = arith.constant 0 : i32
    return %arg1, %c0_i32, %c0_i32_0 : i32, i32, i32
  }
  func.func @transform_4(%arg0: i32, %arg1: i32) -> (i32, i32, i32) {
    %c0_i32 = arith.constant 0 : i32
    %c0_i32_0 = arith.constant 0 : i32
    %c0_i32_1 = arith.constant 0 : i32
    return %arg1, %c0_i32, %c0_i32_0 : i32, i32, i32
  }
  func.func @transform_5(%arg0: i32, %arg1: i32) -> (i32, i32, i32) {
    %c0_i32 = arith.constant 0 : i32
    %c0_i32_0 = arith.constant 0 : i32
    %c0_i32_1 = arith.constant 0 : i32
    return %arg1, %c0_i32, %c0_i32_0 : i32, i32, i32
  }
  func.func @transform_6(%arg0: i32, %arg1: i32) -> (i32, i32, i32) {
    %c0_i32 = arith.constant 0 : i32
    %c0_i32_0 = arith.constant 0 : i32
    %c0_i32_1 = arith.constant 0 : i32
    return %arg1, %c0_i32, %c0_i32_0 : i32, i32, i32
  }
  func.func @transform_7(%arg0: i32, %arg1: i32) -> (i32, i32, i32) {
    %c0_i32 = arith.constant 0 : i32
    %c0_i32_0 = arith.constant 0 : i32
    %c0_i32_1 = arith.constant 0 : i32
    return %arg1, %c0_i32, %c0_i32_0 : i32, i32, i32
  }
  func.func @transform_8(%arg0: i32, %arg1: i32) -> (i32, i32, i32) {
    %c0_i32 = arith.constant 0 : i32
    %c0_i32_0 = arith.constant 0 : i32
    %c0_i32_1 = arith.constant 0 : i32
    return %arg1, %c0_i32, %c0_i32_0 : i32, i32, i32
  }
  func.func @transform_9(%arg0: i32, %arg1: i32) -> (i32, i32, i32) {
    %c0_i32 = arith.constant 0 : i32
    %c0_i32_0 = arith.constant 0 : i32
    %c0_i32_1 = arith.constant 0 : i32
    return %arg1, %c0_i32, %c0_i32_0 : i32, i32, i32
  }
  func.func @transform_10(%arg0: i32, %arg1: i32) -> (i32, i32, i32) {
    %c0_i32 = arith.constant 0 : i32
    %c0_i32_0 = arith.constant 0 : i32
    %c0_i32_1 = arith.constant 0 : i32
    return %arg1, %c0_i32, %c0_i32_0 : i32, i32, i32
  }
  func.func @transform_11(%arg0: i32, %arg1: i32) -> (i32, i32, i32) {
    %c0_i32 = arith.constant 0 : i32
    %c0_i32_0 = arith.constant 0 : i32
    %c0_i32_1 = arith.constant 0 : i32
    return %arg1, %c0_i32, %c0_i32_0 : i32, i32, i32
  }
  func.func @transform_12(%arg0: i32, %arg1: i32) -> (i32, i32, i32) {
    %c0_i32 = arith.constant 0 : i32
    %c0_i32_0 = arith.constant 0 : i32
    %c0_i32_1 = arith.constant 0 : i32
    return %arg1, %c0_i32, %c0_i32_0 : i32, i32, i32
  }
  func.func @transform_13(%arg0: i32, %arg1: i32) -> (i32, i32, i32) {
    %c0_i32 = arith.constant 0 : i32
    %c0_i32_0 = arith.constant 0 : i32
    %c0_i32_1 = arith.constant 0 : i32
    return %arg1, %c0_i32, %c0_i32_0 : i32, i32, i32
  }
  func.func @transform_14(%arg0: i32, %arg1: i32) -> (i32, i32) {
    %c0_i32 = arith.constant 0 : i32
    %c0_i32_0 = arith.constant 0 : i32
    %c0_i32_1 = arith.constant 0 : i32
    return %c0_i32, %c0_i32_0 : i32, i32
  }
  func.func @transform_15(%arg0: i32, %arg1: i32) -> (i32, i32) {
    %c0_i32 = arith.constant 0 : i32
    %c0_i32_0 = arith.constant 0 : i32
    %c0_i32_1 = arith.constant 0 : i32
    return %c0_i32, %c0_i32_0 : i32, i32
  }
  func.func @transform_16(%arg0: i32, %arg1: i32) -> (i32, i32) {
    %c0_i32 = arith.constant 0 : i32
    %c0_i32_0 = arith.constant 0 : i32
    return %arg0, %c0_i32 : i32, i32
  }
}

</mosaic_0001>

<bundles_post_ra>
// kernel: tpu_custom_call.1
= control target key start
LH: loop header
LB: loop body
LE: loop exit
PB: predicated region body
PF: predicated region fallthrough
CT: control target
= control target key end

     0   :  { %s3379_s0 = inlined_call_operand.vmem [shape: f32[16,32], index: 0, kind: input, shape index: {}]   ;;  %s3380_s1 = inlined_call_operand.vmem [shape: f32[2,8,8], index: 1, kind: input, shape index: {}]   ;;  %s3381_s2 = inlined_call_operand.vmem [shape: bf16[2,32,96], index: 2, kind: input, shape index: {}]   ;;  %s3382_s3 = inlined_call_operand.vmem [shape: f32[2,1,96], index: 3, kind: input, shape index: {}]   ;;  %s3383_s4 = inlined_call_operand.vmem [shape: bf16[2,32,32], index: 4, kind: input, shape index: {}]   ;;  %s3384_s5 = inlined_call_operand.vmem [shape: f32[2,1,32], index: 5, kind: input, shape index: {}]   ;;  %s3385_s6 = inlined_call_operand.vmem [shape: f32[2,1,32], index: 6, kind: input, shape index: {}]   ;;  %s3386_s7 = inlined_call_operand.vmem [shape: f32[2,1,32], index: 7, kind: input, shape index: {}]   ;;  %s3387_s8 = inlined_call_operand.vmem [shape: f32[2,1,32], index: 8, kind: input, shape index: {}]   ;;  %s3388_s9 = inlined_call_operand.vmem [shape: f32[2,1,32], index: 9, kind: input, shape index: {}]   ;;  %s3389_s10 = inlined_call_operand.vmem [shape: bf16[2,32,128], index: 10, kind: input, shape index: {}]   ;;  %s3390_s11 = inlined_call_operand.vmem [shape: f32[2,1,128], index: 11, kind: input, shape index: {}]   ;;  %s3391_s12 = inlined_call_operand.vmem [shape: bf16[2,128,32], index: 12, kind: input, shape index: {}]   ;;  %s3392_s13 = inlined_call_operand.vmem [shape: f32[2,1,32], index: 13, kind: input, shape index: {}]   ;;  %s3393_s14 = inlined_call_operand.vmem [shape: f32[1,32], index: 14, kind: input, shape index: {}]   ;;  %s3394_s15 = inlined_call_operand.vmem [shape: f32[1,32], index: 15, kind: input, shape index: {}]   ;;  %s3395_s16 = inlined_call_operand.hbm [shape: f32[16,32], index: 16, kind: output, shape index: {}]  }
   0x1   :  { %3412 = sst [smem:[#allocation21_spill]] %s3379_s0 }
   0x2   :  { %3413 = sst [smem:[#allocation22_spill]] %s3380_s1 }
   0x3   :  { %3414 = sst [smem:[#allocation23_spill]] %s3381_s2 }
   0x4   :  { %3415 = sst [smem:[#allocation24_spill]] %s3382_s3 }
   0x5   :  { %3416 = sst [smem:[#allocation25_spill]] %s3383_s4 }
   0x6   :  { %3417 = sst [smem:[#allocation26_spill]] %s3393_s14 }
   0x7   :  { %3418 = sst [smem:[#allocation27_spill]] %s3394_s15 }
   0x8   :  { %3419 = sst [smem:[#allocation28_spill]] %s3395_s16 }
   0x9   :  { %21 = vsyncpa [#allocation4], 0 }
   0xa   :  { %23 = vsyncpa [#allocation4 + $0x1], 0  ;;  %s2920_s21 = smov 0   ;;  %s2922_s22 = smov 0  }
   0xb   :  { %s2924_s23 = smov 0   ;;  %s2926_s24 = smov 0  }
   0xc   :  { %s2928_s25 = smov 0   ;;  %s2930_s26 = smov 0  }
   0xd   :  { %s2932_s27 = smov 0   ;;  %s2934_s28 = smov 0  }
   0xe LB: > { %3420 = sst [smem:[#allocation6_spill]] %s2792_s21  ;;  %s2409_s29 = sadd.s32 4294967295, %s2820_s28   ;;  %s2820_s28 = sphi %s2934_s28, %s29_s28   ;;  %s2816_s27 = sphi %s2932_s27, %s3468_s27   ;;  %s2812_s26 = sphi %s2930_s26, %s3467_s26   ;;  %s2808_s25 = sphi %s2928_s25, %s3466_s25   ;;  %s2804_s24 = sphi %s2926_s24, %s3465_s24   ;;  %s2800_s23 = sphi %s2924_s23, %s3464_s23   ;;  %s2796_s22 = sphi %s2922_s22, %s3463_s22   ;;  %s2792_s21 = sphi %s2920_s21, %s3462_s21  }
   0xf   : > { %3421 = sst [smem:[#allocation7_spill]] %s2796_s22  ;;  %s2410_s30 = sadd.s32 4294967294, %s2820_s28  }
  0x10   : > { %3422 = sst [smem:[#allocation8_spill]] %s2800_s23  ;;  %s38_s0 = sadd.s32 1, %s2812_s26 }
  0x11   : > { %3423 = sst [smem:[#allocation9_spill]] %s2804_s24  ;;  %p39_p0 = scmp.ge.s32.totalorder %s38_s0, 2 }
  0x12   : > { %3424 = sst [smem:[#allocation10_spill]] %s2808_s25  ;;  %s41_s17 = sadd.s32 1, %s2816_s27 }
  0x13   : > { %3425 = sst [smem:[#allocation11_spill]] %s2812_s26  ;;  %p464_p1 = scmp.ne.s32.totalorder %s2800_s23, %s2796_s22 }
  0x14   : > { %3426 = sst [smem:[#allocation12_spill]] %s2816_s27  ;;  %p465_p2 = scmp.eq.s32.totalorder %s2409_s29, 3 }
  0x15   : > { %3427 = sst [smem:[#allocation13_spill]] %s2820_s28  ;;  %s3470_s0 = smov (%p39_p0, %s38_s0), 0 }
  0x16   : > { %3428 = sst [smem:[#allocation14_spill]] %s3470_s0  ;;  %s3472_s17 = smov (!%p39_p0, %s41_s17), %s2816_s27 }
  0x17   : > { %p2969_p3 = por %p465_p2, %p464_p1  ;;  %p470_p4 = scmp.ne.s32.totalorder %s2796_s22, %s2792_s21 }
  0x18   : > { %p43_p5 = scmp.ge.s32.totalorder %s3472_s17, 2  ;;  %p471_p6 = scmp.eq.s32.totalorder %s2410_s30, 3 }
  0x19   : > { %s3429_s18 = scalar_select %p2969_p3, 1, 0 }
  0x1a   : > { %p2413_p7 = scmp.ge.s32.totalorder %s2820_s28, 1  ;;  %p589_p8 = scmp.lt.s32.totalorder %s2820_s28, 5 }
  0x1b   : > { %3430 = sst [smem:[#allocation15_spill]] %s3429_s18  ;;  %s3474_s17 = smov (%p43_p5, %s3472_s17), 0 }
  0x1c   : > { %3431 = sst [smem:[#allocation16_spill]] %s3474_s17  ;;  %p2979_p9 = por %p471_p6, %p470_p4 }
  0x1d   : > { %p590_p10 = pnand %p2413_p7, %p589_p8  ;;  %s451_s20 = ssub.s32 %s2816_s27, %s3474_s17 }
  0x1e   : > { %s3432_s19 = scalar_select %p2979_p9, 1, 0 }
  0x1f   : > { %s454_s29 = sadd.s32 1, %s2800_s23  ;;  %p452_p11 = scmp.eq.s32.totalorder %s451_s20, 0 }
  0x20   : > { %3433 = sst [smem:[#allocation17_spill]] %s3432_s19  ;;  %593 = sbr.rel (%p590_p10) target bundleno = 3015 (0xbc7), region = 84 }
  0x21   : > { %s2987_s0 = scalar_select %p452_p11, %s2800_s23, %s454_s29  }
  0x23   : > { %3434 = sst [smem:[#allocation18_spill]] %s2987_s0 }
  0x25   : > { %s3401_s30 = sand.u32 1, %s2796_s22   ;;  %p686_p12 = scmp.lt.s32.totalorder %s2808_s25, 1 }
  0x26   : > { %s2993_s26 = sshll.u32 %s3401_s30, 3  ;;  %p694_p13 = scmp.lt.s32.totalorder %s2804_s24, 1 }
  0x27   : > { %s687_s19 = scalar_select %p686_p12, %s2808_s25, 1 }
  0x28   : > { %s2998_s21 = scalar_select %p694_p13, %s2804_s24, 1 }
  0x29   : > { %s2415_s20 = sshll.u32 %s687_s19, 3  ;;  %s3435_s27 = sld [smem:[#allocation21_spill]] }
  0x2a   : > { %s3436_s1 = sld [smem:[#allocation22_spill]]  ;;  %s2475_s16 = sshll.u32 %s2998_s21, 4 }
  0x2b   : > { %s3439_s2 = sld [smem:[#allocation23_spill]]  ;;  %s3046_s29 = scalar_lea.vmem %s3389_s10, %s2475_s16 }
  0x2c   : > { %s3440_s4 = sld [smem:[#allocation25_spill]]  ;;  %s2478_s0 = sshll.u32 %s2998_s21, 6 }
  0x2d   : > { %s3056_s25 = scalar_lea.vmem %s3391_s12, %s2478_s0  ;;  %s737_s3 = scalar_lea.vmem %s3392_s13, %s2998_s21 }
  0x2e   : > { %s685_s24 = scalar_lea.vmem [#allocation3], %s2993_s26  ;;  %s3442_s17 = sld [smem:[#allocation9_spill]] }
  0x2f   : > { %s689_s30 = scalar_lea.vmem %s3435_s27, %s2415_s20 }
  0x30   : > { %s3006_s28 = scalar_lea.vmem %s3436_s1, %s2415_s20  ;;  %s729_s20 = scalar_lea.vmem %s3390_s11, %s2998_s21 }
  0x31   : > { %3437 = sst [smem:[#allocation19_spill]] %s3006_s28  ;;  %s3016_s19 = scalar_lea.vmem %s3439_s2, %s2475_s16 }
  0x32   : > { %s3021_s27 = scalar_lea.vmem %s3440_s4, %s2475_s16  ;;  %s712_s28 = scalar_lea.vmem %s3385_s6, %s2998_s21 }
  0x33   : > { %3441 = sst [smem:[#allocation20_spill]] %s3021_s27  ;;  %s718_s2 = scalar_lea.vmem %s3387_s8, %s2998_s21 }
  0x34   : > { %p2425_p0 = scmp.ne.s32.totalorder %s3442_s17, 0 }
  0x36   : > { %742 = sbr.rel (%p2425_p0) target bundleno = 61 (0x3d), region = 88 }
  0x3b   : > { %v743_v0 = vld [vmem:[%s689_s30] sm:$0xff]  ;;  %vm744_vm0 = vcmask 261120  }
  0x3c   : > { %745 = vst.msk [vmem:[#allocation2] sm:$0xff] %vm744_vm0, %v743_v0 }
  0x3d PF: > { %vm749_vm1 = vcmask 261120   ;;  %v2688_v8 = vld [vmem:[%s3016_s19 + $0x8] sm:$0xff]   ;;  %v2822_v9 = vmov 0.0   ;;  %vm2823_vm2 = vmmov 0   ;;  %v2689_v10 = vld [vmem:[%s3016_s19] sm:$0xff]   ;;  %s3443_s27 = scalar_lea.vmem %s3386_s7, %s2998_s21  ;;  %s3444_s23 = sld [smem:[#allocation24_spill]]  ;;  %v860_v32 = vlaneseq }
  0x3e   : > { %2513 = vmatprep.subr.bf16.mxu0 %v2822_v9  ;;  %2517 = vmatprep.mubr.msk.bf16.mxu0 %vm2823_vm2, %v2822_v9  ;;  %v2426_v15 = vld [vmem:[%s712_s28] ss:$0 sm:$0xff]  ;;  %s2824_s28 = smov 104   ;;  %s2825_s22 = smov 120   ;;  %v2828_v30 = vmov 1983009808  }
  0x3f   : > { %2514 = vmatpush3.bf16.msra.mxu0 %v2688_v8  ;;  %2533 = vmatprep.subr.bf16.mxu1 %v2822_v9  ;;  %v2427_v17 = vld [vmem:[%s3443_s27] ss:$0 sm:$0xff]  ;;  %s2826_s18 = smov 112   ;;  %s2827_s14 = smov 96   ;;  %v858_v31 = vunpack.c.l.s4 %v2828_v30  ;;  %v861_v34 = vshrl.u32 %v860_v32, 7  ;;  %vm1296_vm3 = vcmask 64512  }
  0x40   : > { %2515 = vmatprep.subr.bf16.mxu0 %v2822_v9  ;;  %2535 = vmatprep.mubr.msk.bf16.mxu1 %vm2823_vm2, %v2822_v9  ;;  %v2829_v36 = vmov 1934713408   ;;  %s3446_s15 = sld [smem:[#allocation19_spill]]  ;;  %s2830_s4 = smov 64   ;;  %vm1536_vm4 = vcmask 1043456   ;;  %vm1867_vm5 = vcmask 130048  }
  0x41   : > { %v859_v33 = vunpack.c.0.s8 %v858_v31  ;;  %v890_v37 = vunpack.c.l.s4 %v2829_v36  ;;  %s3447_s16 = sld [smem:[#allocation20_spill]]  ;;  %s2831_s30 = smov 16   ;;  %vm1869_vm6 = vcmask 195584  }
  0x42   : > { %s2832_s19 = smov 8   ;;  %s2833_s27 = smov 24  }
  0x43   : > { %v3064_v1 = vld [vmem:[#allocation2] sm:$0xff]  ;;  %2516 = vmatpush3.bf16.msra.mxu0 %v2689_v10  ;;  %s3445_s1 = scalar_lea.vmem %s3444_s23, %s2998_s21  ;;  %v3117_v40 = vsub.s32 %v859_v33, %v861_v34  ;;  %v891_v44 = vunpack.c.0.s8 %v890_v37  ;;  %s3448_s23 = scalar_lea.vmem %s3384_s5, %s2998_s21 }
  0x44   : > { %v750_v2 = vsel %vm749_vm1, %v3064_v1, 0.0  ;;  %2521 = vmatprep.subr.bf16.mxu0 %v2822_v9  ;;  %v2428_v21 = vld [vmem:[%s3445_s1] ss:$0 sm:$0xff] }
  0x45   : > { %751 = vadd.xlane.f32.xlu0 %v750_v2  ;;  %v3127_v50 = vsub.s32 %v891_v44, %v861_v34 }
  0xce   : > { %v752_v3 = vpop.xlane.xlu0 %751 }
  0xcf   : > { %v754_v4 = vmul.f32 0.03125, %v752_v3 }
  0xd1   : > { %v755_v5 = vsub.f32 %v3064_v1, %v754_v4 }
  0xd3   : > { %v756_v6 = vmul.f32 %v755_v5, %v755_v5 }
  0xd5   : > { %v757_v7 = vsel %vm749_vm1, %v756_v6, 0.0 }
  0xd6   : > { %758 = vadd.xlane.f32.xlu0 %v757_v7 }
 0x15f   : > { %v759_v11 = vpop.xlane.xlu0 %758 }
 0x160   : > { %v760_v12 = vmul.f32 0.03125, %v759_v11 }
 0x162   : > { %v761_v13 = vadd.f32 1e-05, %v760_v12 }
 0x164   : > { %2702 = vrsqrt.f32 %v761_v13 }
 0x171   : > { %v2703_v14 = vpop.eup %2702 }
 0x172   : > { %v763_v16 = vmul.f32 %v2703_v14, %v755_v5 }
 0x174   : > { %v770_v18 = vmul.f32 %v2426_v15, %v763_v16 }
 0x176   : > { %v777_v19 = vadd.f32 %v2427_v17, %v770_v18 }
 0x178   : > { %v778_v20 = vpack.c.bf16 %v777_v19, %v777_v19 }
 0x17a   : > { %2518 = vmatmul.mubr.msk.bf16.vlgmr.msra.gmra.mxu0 %vm749_vm1, %v778_v20 }
 0x17b   : > { %2523 = vmatprep.mubr.msk.bf16.mxu0 %vm2823_vm2, %v2822_v9 }
 0x23a   : > { %v839_v22 = vpop.f32.mrf.mxu0 }
 0x23b   : > { %v3098_v23 = vadd.f32 %v2428_v21, %v839_v22 }
 0x23c   : > { %v2519_v24 = vpop.f32.mrf.mxu0 }
 0x23d   : > { %852 = vrot.lane.b32.xlu0 %v3098_v23, %s2824_s28  ;;  %846 = vrot.lane.b32.xlu1 %v3098_v23, %s2825_s22 }
 0x23e   : > { %v842_v25 = vpop.f32.mrf.mxu0 }
 0x240   : > { %v2520_v26 = vpop.f32.mrf.mxu0 }
 0x241   : > { %849 = vrot.lane.b32.xlu1 %v3098_v23, %s2826_s18 }
 0x245   : > { %991 = vrot.lane.b32.xlu1 %v3098_v23, %s2827_s14 }
 0x2af   : > { %v3104_v27 = vpop.permute.xlu1 %846  ;;  %v3110_v29 = vpop.permute.xlu0 %852 }
 0x2b0   : > { %993 = vrot.lane.b32.xlu1 %v3104_v27, %s2827_s14  ;;  %v871_v41 = vcombine.low %v3104_v27, %v3110_v29  ;;  %v872_v42 = vcombine.high %v3104_v27, %v3110_v29 }
 0x2b2   : > { %v879_v47 = vrot.slane %v871_v41, %v3117_v40  ;;  %v886_v48 = vrot.slane %v872_v42, %v3117_v40 }
 0x2b3   : > { %v3107_v28 = vpop.permute.xlu1 %849 }
 0x2b4   : > { %995 = vrot.lane.b32.xlu1 %v3107_v28, %s2827_s14  ;;  %v855_v38 = vcombine.low %v3098_v23, %v3107_v28  ;;  %v856_v39 = vcombine.high %v3098_v23, %v3107_v28 }
 0x2b6   : > { %v863_v45 = vrot.slane %v855_v38, %v3117_v40  ;;  %v870_v46 = vrot.slane %v856_v39, %v3117_v40 }
 0x2b7   : > { %v992_v35 = vpop.permute.xlu1 %991 }
 0x2b8   : > { %997 = vrot.lane.b32.xlu1 %v3110_v29, %s2827_s14  ;;  %v887_v51 = vcombine.low %v863_v45, %v879_v47  ;;  %v888_v52 = vcombine.high %v863_v45, %v879_v47  ;;  %v903_v53 = vcombine.low %v870_v46, %v886_v48  ;;  %v904_v54 = vcombine.high %v870_v46, %v886_v48 }
 0x2ba   : > { %v895_v60 = vrot.slane %v887_v51, %v3127_v50  ;;  %v902_v61 = vrot.slane %v888_v52, %v3127_v50  ;;  %v911_v62 = vrot.slane %v903_v53, %v3127_v50  ;;  %v918_v63 = vrot.slane %v904_v54, %v3127_v50 }
 0x2bc   : > { %v923_v10 = vcombine.low %v895_v60, %v902_v61  ;;  %v2432_v11 = vcombine.high %v895_v60, %v902_v61  ;;  %v939_v12 = vcombine.low %v911_v62, %v918_v63  ;;  %v2433_v13 = vcombine.high %v911_v62, %v918_v63 }
 0x2be   : > { %v930_v22 = vrot.slane %v923_v10, %v3117_v40  ;;  %v938_v24 = vrot.slane %v2432_v11, %v3117_v40  ;;  %v946_v25 = vrot.slane %v939_v12, %v3117_v40  ;;  %v954_v26 = vrot.slane %v2433_v13, %v3117_v40  ;;  %v1295_v10 = vld [vmem:[%s3446_s15] sm:$0xff] }
 0x2c0   : > { %v955_v38 = vcombine.low %v930_v22, %v938_v24  ;;  %v971_v39 = vcombine.low %v946_v25, %v954_v26  ;;  %v956_v41 = vcombine.high %v930_v22, %v938_v24  ;;  %v972_v42 = vcombine.high %v946_v25, %v954_v26 }
 0x2c2   : > { %v979_v51 = vrot.slane %v971_v39, %v3127_v50  ;;  %v970_v54 = vrot.slane %v956_v41, %v3127_v50 }
 0x322   : > { %v994_v43 = vpop.permute.xlu1 %993 }
 0x326   : > { %v996_v49 = vpop.permute.xlu1 %995 }
 0x327   : > { %v1003_v55 = vcombine.low %v992_v35, %v996_v49  ;;  %v1004_v56 = vcombine.high %v992_v35, %v996_v49  ;;  %v963_v49 = vrot.slane %v955_v38, %v3127_v50 }
 0x329   : > { %v1011_v0 = vrot.slane %v1003_v55, %v3117_v40  ;;  %v1018_v2 = vrot.slane %v1004_v56, %v3117_v40  ;;  %v986_v55 = vrot.slane %v972_v42, %v3127_v50 }
 0x32a   : > { %v998_v57 = vpop.permute.xlu1 %997 }
 0x32b   : > { %v1019_v58 = vcombine.low %v994_v43, %v998_v57  ;;  %v1020_v59 = vcombine.high %v994_v43, %v998_v57  ;;  %v989_v60 = vcombine.low %v970_v54, %v986_v55 }
 0x32d   : > { %v1027_v3 = vrot.slane %v1019_v58, %v3117_v40  ;;  %v1034_v4 = vrot.slane %v1020_v59, %v3117_v40  ;;  %v987_v59 = vcombine.low %v963_v49, %v979_v51  ;;  %v1289_v63 = vpack.c.bf16 %v989_v60, %v989_v60 }
 0x32f   : > { %v1035_v5 = vcombine.low %v1011_v0, %v1027_v3  ;;  %v1036_v6 = vcombine.high %v1011_v0, %v1027_v3  ;;  %v1051_v7 = vcombine.low %v1018_v2, %v1034_v4  ;;  %v1052_v8 = vcombine.high %v1018_v2, %v1034_v4 }
 0x330   : > { %v1287_v62 = vpack.c.bf16 %v987_v59, %v987_v59  ;;  %v988_v3 = vcombine.high %v963_v49, %v979_v51 }
 0x331   : > { %v1043_v14 = vrot.slane %v1035_v5, %v3127_v50  ;;  %v1050_v15 = vrot.slane %v1036_v6, %v3127_v50  ;;  %v1059_v16 = vrot.slane %v1051_v7, %v3127_v50  ;;  %v1066_v17 = vrot.slane %v1052_v8, %v3127_v50 }
 0x332   : > { %v1288_v5 = vpack.c.bf16 %v988_v3, %v988_v3  ;;  %v990_v7 = vcombine.high %v970_v54, %v986_v55 }
 0x333   : > { %v1071_v18 = vcombine.low %v1043_v14, %v1050_v15  ;;  %v2434_v19 = vcombine.high %v1043_v14, %v1050_v15  ;;  %v1087_v20 = vcombine.low %v1059_v16, %v1066_v17  ;;  %v2435_v21 = vcombine.high %v1059_v16, %v1066_v17 }
 0x334   : > { %v1290_v8 = vpack.c.bf16 %v990_v7, %v990_v7 }
 0x335   : > { %v1078_v30 = vrot.slane %v1071_v18, %v3117_v40  ;;  %v1086_v31 = vrot.slane %v2434_v19, %v3117_v40  ;;  %v1094_v32 = vrot.slane %v1087_v20, %v3117_v40  ;;  %v1102_v33 = vrot.slane %v2435_v21, %v3117_v40 }
 0x337   : > { %v1103_v34 = vcombine.low %v1078_v30, %v1086_v31  ;;  %v1119_v35 = vcombine.low %v1094_v32, %v1102_v33  ;;  %v1104_v36 = vcombine.high %v1078_v30, %v1086_v31  ;;  %v1120_v37 = vcombine.high %v1094_v32, %v1102_v33 }
 0x339   : > { %v1111_v43 = vrot.slane %v1103_v34, %v3127_v50  ;;  %v1127_v44 = vrot.slane %v1119_v35, %v3127_v50  ;;  %v1118_v45 = vrot.slane %v1104_v36, %v3127_v50  ;;  %v1134_v46 = vrot.slane %v1120_v37, %v3127_v50 }
 0x33b   : > { %v1135_v47 = vcombine.low %v1111_v43, %v1127_v44  ;;  %v1137_v48 = vcombine.low %v1118_v45, %v1134_v46  ;;  %v1136_v58 = vcombine.high %v1111_v43, %v1127_v44  ;;  %v1138_v2 = vcombine.high %v1118_v45, %v1134_v46 }
 0x33d   : > { %v1291_v52 = vpack.c.bf16 %v1135_v47, %v1135_v47  ;;  %v1293_v53 = vpack.c.bf16 %v1137_v48, %v1137_v48  ;;  %v1292_v61 = vpack.c.bf16 %v1136_v58, %v1136_v58  ;;  %v1294_v4 = vpack.c.bf16 %v1138_v2, %v1138_v2 }
 0x33f   : > { %v1301_v56 = vsel %vm1296_vm3, %v1291_v52, 0  ;;  %v1393_v57 = vsel %vm1296_vm3, %v1293_v53, 0  ;;  %v1347_v0 = vsel %vm1296_vm3, %v1292_v61, 0  ;;  %v1439_v6 = vsel %vm1296_vm3, %v1294_v4, 0 }
 0x340   : > { %2522 = vmatpush3.bf16.xpose.msra.mxu0 %v1301_v56  ;;  %2534 = vmatpush3.bf16.xpose.msra.mxu1 %v1393_v57 }
 0x341   : > { %2527 = vmatprep.subr.bf16.mxu0 %v2822_v9  ;;  %2545 = vmatprep.subr.bf16.mxu1 %v2822_v9 }
 0x347   : > { %2524 = vmatmul.mubr.msk.bf16.vlgmr.msra.gmra.mxu0 %vm1296_vm3, %v1287_v62  ;;  %2536 = vmatmul.mubr.msk.bf16.vlgmr.msra.gmra.mxu1 %vm1296_vm3, %v1289_v63 }
 0x348   : > { %2528 = vmatpush3.bf16.xpose.msra.mxu0 %v1347_v0  ;;  %2529 = vmatprep.mubr.msk.bf16.mxu0 %vm2823_vm2, %v2822_v9 }
 0x349   : > { %2539 = vmatprep.subr.bf16.mxu0 %v2822_v9  ;;  %2547 = vmatprep.mubr.msk.bf16.mxu1 %vm2823_vm2, %v2822_v9 }
 0x34f   : > { %2530 = vmatmul.mubr.msk.bf16.vlgmr.msra.gmra.mxu0 %vm1296_vm3, %v1288_v5 }
 0x350   : > { %2540 = vmatpush3.bf16.xpose.msra.mxu0 %v1439_v6  ;;  %2541 = vmatprep.mubr.msk.bf16.mxu0 %vm2823_vm2, %v2822_v9 }
 0x351   : > { %2551 = vmatprep.subr.bf16.mxu0 %v2822_v9 }
 0x357   : > { %2542 = vmatmul.mubr.msk.bf16.vlgmr.msra.gmra.mxu0 %vm1296_vm3, %v1290_v8 }
 0x358   : > { %2553 = vmatprep.mubr.msk.bf16.mxu0 %vm2823_vm2, %v2822_v9 }
 0x407   : > { %v1337_v11 = vpop.f32.mrf.mxu0  ;;  %v1429_v12 = vpop.f32.mrf.mxu1 }
 0x408   : > { %v1338_v13 = vadd.f32 %v1337_v11, %v1295_v10  ;;  %v1430_v16 = vadd.f32 %v1429_v12, %v1295_v10 }
 0x409   : > { %v2525_v14 = vpop.f32.mrf.mxu0  ;;  %v2537_v15 = vpop.f32.mrf.mxu1 }
 0x40a   : > { %v1481_v17 = vsel %vm1296_vm3, %v1338_v13, -inf  ;;  %v1487_v22 = vsel %vm1296_vm3, %v1430_v16, -inf }
 0x40b   : > { %v1432_v18 = vpop.f32.mrf.mxu1  ;;  %1482 = vmax.xlane.f32.xlu1 %v1481_v17  ;;  %v1340_v19 = vpop.f32.mrf.mxu0 }
 0x40d   : > { %v2526_v20 = vpop.f32.mrf.mxu0  ;;  %v2538_v21 = vpop.f32.mrf.mxu1 }
 0x40f   : > { %1488 = vmax.xlane.f32.xlu1 %v1487_v22  ;;  %v1383_v24 = vpop.f32.mrf.mxu0 }
 0x410   : > { %v1384_v25 = vadd.f32 %v1383_v24, %v1295_v10 }
 0x411   : > { %v2531_v26 = vpop.f32.mrf.mxu0 }
 0x412   : > { %v1484_v30 = vsel %vm1296_vm3, %v1384_v25, -inf }
 0x413   : > { %1485 = vmax.xlane.f32.xlu0 %v1484_v30  ;;  %v1386_v31 = vpop.f32.mrf.mxu0 }
 0x415   : > { %v2532_v32 = vpop.f32.mrf.mxu0 }
 0x417   : > { %v1475_v33 = vpop.f32.mrf.mxu0 }
 0x418   : > { %v1476_v34 = vadd.f32 %v1475_v33, %v1295_v10 }
 0x419   : > { %v2543_v35 = vpop.f32.mrf.mxu0 }
 0x41a   : > { %v1490_v36 = vsel %vm1296_vm3, %v1476_v34, -inf }
 0x41b   : > { %1491 = vmax.xlane.f32.xlu0 %v1490_v36  ;;  %v1478_v37 = vpop.f32.mrf.mxu0 }
 0x41d   : > { %v2544_v38 = vpop.f32.mrf.mxu0 }
 0x420   : > { %1139 = vrot.lane.b32.xlu1 %v3098_v23, %s2830_s4 }
 0x494   : > { %v1483_v39 = vpop.xlane.xlu1 %1482 }
 0x495   : > { %v1493_v41 = vsub.f32 %v1338_v13, %v1483_v39 }
 0x497   : > { %v1497_v42 = vmul.f32 1.442695, %v1493_v41 }
 0x498   : > { %v1489_v52 = vpop.xlane.xlu1 %1488 }
 0x499   : > { %2704 = vpow2.f32 %v1497_v42  ;;  %v1495_v53 = vsub.f32 %v1430_v16, %v1489_v52 }
 0x49b   : > { %v1501_v55 = vmul.f32 1.442695, %v1495_v53 }
 0x49c   : > { %v1486_v43 = vpop.xlane.xlu0 %1485 }
 0x49d   : > { %v1494_v44 = vsub.f32 %v1384_v25, %v1486_v43 }
 0x49f   : > { %v1499_v45 = vmul.f32 1.442695, %v1494_v44 }
 0x4a1   : > { %2706 = vpow2.f32 %v1499_v45 }
 0x4a4   : > { %v1492_v23 = vpop.xlane.xlu0 %1491 }
 0x4a5   : > { %v1496_v51 = vsub.f32 %v1476_v34, %v1492_v23 }
 0x4a6   : > { %v3183_v46 = vpop.eup %2704 }
 0x4a7   : > { %v1505_v47 = vsel %vm1296_vm3, %v3183_v46, 0.0  ;;  %v1503_v54 = vmul.f32 1.442695, %v1496_v51 }
 0x4a8   : > { %1506 = vadd.xlane.f32.xlu1 %v1505_v47 }
 0x4a9   : > { %2708 = vpow2.f32 %v1503_v54 }
 0x4aa   : > { %2710 = vpow2.f32 %v1501_v55 }
 0x4ae   : > { %v3187_v48 = vpop.eup %2706 }
 0x4af   : > { %v1508_v49 = vsel %vm1296_vm3, %v3187_v48, 0.0 }
 0x4b0   : > { %1509 = vadd.xlane.f32.xlu0 %v1508_v49 }
 0x4b6   : > { %v3194_v56 = vpop.eup %2708 }
 0x4b7   : > { %v1514_v57 = vsel %vm1296_vm3, %v3194_v56, 0.0  ;;  %v3198_v58 = vpop.eup %2710 }
 0x4b9   : > { %1143 = vrot.lane.b32.xlu1 %v3107_v28, %s2830_s4  ;;  %v1511_v28 = vsel %vm1296_vm3, %v3198_v58, 0.0 }
 0x4bd   : > { %1145 = vrot.lane.b32.xlu1 %v3110_v29, %s2830_s4 }
 0x4c6   : > { %1141 = vrot.lane.b32.xlu0 %v3104_v27, %s2830_s4  ;;  %v1140_v27 = vpop.permute.xlu1 %1139 }
 0x4e1   : > { %1515 = vadd.xlane.f32.xlu1 %v1514_v57 }
 0x4e5   : > { %1512 = vadd.xlane.f32.xlu0 %v1511_v28 }
 0x531   : > { %v1507_v29 = vpop.xlane.xlu1 %1506 }
 0x532   : > { %2712 = vrcp.f32 %v1507_v29 }
 0x535   : > { %v1144_v59 = vpop.permute.xlu1 %1143 }
 0x536   : > { %v1151_v61 = vcombine.low %v1140_v27, %v1144_v59  ;;  %v1152_v62 = vcombine.high %v1140_v27, %v1144_v59 }
 0x538   : > { %v1159_v4 = vrot.slane %v1151_v61, %v3117_v40  ;;  %v1166_v5 = vrot.slane %v1152_v62, %v3117_v40 }
 0x539   : > { %v1510_v60 = vpop.xlane.xlu0 %1509  ;;  %v1146_v63 = vpop.permute.xlu1 %1145 }
 0x53a   : > { %2714 = vrcp.f32 %v1510_v60 }
 0x53d   : > { %v1142_v0 = vpop.permute.xlu0 %1141 }
 0x53e   : > { %v1167_v2 = vcombine.low %v1142_v0, %v1146_v63  ;;  %v1168_v3 = vcombine.high %v1142_v0, %v1146_v63 }
 0x53f   : > { %v2713_v33 = vpop.eup %2712 }
 0x540   : > { %v1175_v6 = vrot.slane %v1167_v2, %v3117_v40  ;;  %v1182_v7 = vrot.slane %v1168_v3, %v3117_v40  ;;  %v1521_v47 = vmul.f32 %v2713_v33, %v3183_v46 }
 0x542   : > { %v1183_v8 = vcombine.low %v1159_v4, %v1175_v6  ;;  %v1184_v10 = vcombine.high %v1159_v4, %v1175_v6  ;;  %v1199_v11 = vcombine.low %v1166_v5, %v1182_v7  ;;  %v1200_v12 = vcombine.high %v1166_v5, %v1182_v7 }
 0x543   : > { %v1525_v54 = vpack.c.bf16 %v1521_v47, %v1521_v47 }
 0x544   : > { %v1191_v13 = vrot.slane %v1183_v8, %v3127_v50  ;;  %v1198_v14 = vrot.slane %v1184_v10, %v3127_v50  ;;  %v1207_v15 = vrot.slane %v1199_v11, %v3127_v50  ;;  %v1214_v16 = vrot.slane %v1200_v12, %v3127_v50 }
 0x546   : > { %v1219_v17 = vcombine.low %v1191_v13, %v1198_v14  ;;  %v2436_v18 = vcombine.high %v1191_v13, %v1198_v14  ;;  %v1235_v19 = vcombine.low %v1207_v15, %v1214_v16  ;;  %v2437_v20 = vcombine.high %v1207_v15, %v1214_v16 }
 0x547   : > { %v2715_v38 = vpop.eup %2714 }
 0x548   : > { %v1226_v21 = vrot.slane %v1219_v17, %v3117_v40  ;;  %v1234_v22 = vrot.slane %v2436_v18, %v3117_v40  ;;  %v1242_v24 = vrot.slane %v1235_v19, %v3117_v40  ;;  %v1250_v25 = vrot.slane %v2437_v20, %v3117_v40 }
 0x549   : > { %v1522_v49 = vmul.f32 %v2715_v38, %v3187_v48 }
 0x54a   : > { %v1251_v26 = vcombine.low %v1226_v21, %v1234_v22  ;;  %v1267_v30 = vcombine.low %v1242_v24, %v1250_v25  ;;  %v1252_v31 = vcombine.high %v1226_v21, %v1234_v22  ;;  %v1268_v32 = vcombine.high %v1242_v24, %v1250_v25 }
 0x54b   : > { %v1526_v55 = vpack.c.bf16 %v1522_v49, %v1522_v49 }
 0x54c   : > { %v1259_v34 = vrot.slane %v1251_v26, %v3127_v50  ;;  %v1275_v35 = vrot.slane %v1267_v30, %v3127_v50  ;;  %v1266_v36 = vrot.slane %v1252_v31, %v3127_v50  ;;  %v1282_v37 = vrot.slane %v1268_v32, %v3127_v50  ;;  %v2690_v30 = vld [vmem:[%s3447_s16 + $0x8] sm:$0xff]  }
 0x54e   : > { %v1283_v39 = vcombine.low %v1259_v34, %v1275_v35  ;;  %v1284_v41 = vcombine.high %v1259_v34, %v1275_v35  ;;  %v1285_v42 = vcombine.low %v1266_v36, %v1282_v37  ;;  %v1286_v43 = vcombine.high %v1266_v36, %v1282_v37 }
 0x550   : > { %v1529_v44 = vpack.c.bf16 %v1283_v39, %v1283_v39  ;;  %v1530_v45 = vpack.c.bf16 %v1284_v41, %v1284_v41  ;;  %v1531_v52 = vpack.c.bf16 %v1285_v42, %v1285_v42  ;;  %v1532_v53 = vpack.c.bf16 %v1286_v43, %v1286_v43  ;;  %v2691_v41 = vld [vmem:[%s3447_s16] sm:$0xff]  }
 0x552   : > { %v1538_v23 = vsel %vm1536_vm4, %v1529_v44, 0  ;;  %v1584_v51 = vsel %vm1536_vm4, %v1530_v45, 0  ;;  %v1630_v46 = vsel %vm1536_vm4, %v1531_v52, 0  ;;  %v1676_v48 = vsel %vm1536_vm4, %v1532_v53, 0 }
 0x553   : > { %2546 = vmatpush3.bf16.msra.mxu1 %v1538_v23  ;;  %2552 = vmatpush3.bf16.msra.mxu0 %v1584_v51 }
 0x554   : > { %2557 = vmatprep.subr.bf16.mxu1 %v2822_v9  ;;  %2563 = vmatprep.subr.bf16.mxu0 %v2822_v9 }
 0x556   : > { %2548 = vmatmul.mubr.msk.bf16.vlgmr.msra.gmra.mxu1 %vm1296_vm3, %v1525_v54  ;;  %2554 = vmatmul.mubr.msk.bf16.vlgmr.msra.gmra.mxu0 %vm1296_vm3, %v1526_v55 }
 0x557   : > { %2558 = vmatpush3.bf16.msra.mxu1 %v1630_v46  ;;  %2564 = vmatpush3.bf16.msra.mxu0 %v1676_v48 }
 0x558   : > { %2565 = vmatprep.mubr.msk.bf16.mxu0 %vm2823_vm2, %v2822_v9  ;;  %2559 = vmatprep.mubr.msk.bf16.mxu1 %vm2823_vm2, %v2822_v9 }
 0x559   : > { %2569 = vmatprep.subr.bf16.mxu1 %v2822_v9  ;;  %2577 = vmatprep.subr.bf16.mxu0 %v2822_v9 }
 0x56a   : > { %v1516_v57 = vpop.xlane.xlu1 %1515 }
 0x56b   : > { %2716 = vrcp.f32 %v1516_v57 }
 0x56e   : > { %v1513_v28 = vpop.xlane.xlu0 %1512 }
 0x56f   : > { %2718 = vrcp.f32 %v1513_v28 }
 0x578   : > { %v2717_v27 = vpop.eup %2716 }
 0x579   : > { %v1524_v29 = vmul.f32 %v2717_v27, %v3194_v56 }
 0x57b   : > { %v1528_v59 = vpack.c.bf16 %v1524_v29, %v1524_v29 }
 0x57c   : > { %v2719_v60 = vpop.eup %2718 }
 0x57d   : > { %2566 = vmatmul.mubr.msk.bf16.vlgmr.msra.gmra.mxu0 %vm1296_vm3, %v1528_v59  ;;  %v1523_v61 = vmul.f32 %v2719_v60, %v3198_v58 }
 0x57e   : > { %2581 = vmatprep.mubr.msk.bf16.mxu0 %vm2823_vm2, %v2822_v9 }
 0x57f   : > { %v1527_v62 = vpack.c.bf16 %v1523_v61, %v1523_v61 }
 0x581   : > { %2560 = vmatmul.mubr.msk.bf16.vlgmr.msra.gmra.mxu1 %vm1296_vm3, %v1527_v62 }
 0x582   : > { %2573 = vmatprep.mubr.msk.bf16.mxu1 %vm2823_vm2, %v2822_v9  ;;  %2570 = vmatpush3.bf16.msra.mxu1 %v2690_v30  ;;  %v2698_v30 = vld [vmem:[%s3056_s25 + $0x18] sm:$0xff]  }
 0x583   : > { %2571 = vmatprep.subr.bf16.mxu1 %v2822_v9 }
 0x586   : > { %2572 = vmatpush3.bf16.msra.mxu1 %v2691_v41 }
 0x587   : > { %2585 = vmatprep.subr.bf16.mxu1 %v2822_v9 }
 0x616   : > { %v1574_v63 = vpop.f32.mrf.mxu1  ;;  %v1620_v0 = vpop.f32.mrf.mxu0 }
 0x618   : > { %v2549_v2 = vpop.f32.mrf.mxu1  ;;  %v2555_v3 = vpop.f32.mrf.mxu0 }
 0x61a   : > { %v1577_v56 = vpop.f32.mrf.mxu1  ;;  %v1623_v4 = vpop.f32.mrf.mxu0 }
 0x61c   : > { %v2550_v5 = vpop.f32.mrf.mxu1  ;;  %v2556_v6 = vpop.f32.mrf.mxu0 }
 0x63d   : > { %v1712_v7 = vpop.f32.mrf.mxu0 }
 0x63e   : > { %v1734_v58 = vcombine.low %v1620_v0, %v1712_v7  ;;  %v1735_v10 = vcombine.high %v1620_v0, %v1712_v7 }
 0x63f   : > { %v2567_v8 = vpop.f32.mrf.mxu0 }
 0x640   : > { %v1742_v17 = vrot.slane %v1734_v58, %v3117_v40  ;;  %v1749_v18 = vrot.slane %v1735_v10, %v3117_v40 }
 0x641   : > { %v1666_v11 = vpop.f32.mrf.mxu1  ;;  %v1715_v12 = vpop.f32.mrf.mxu0 }
 0x642   : > { %v1718_v13 = vcombine.low %v1574_v63, %v1666_v11  ;;  %v1719_v14 = vcombine.high %v1574_v63, %v1666_v11  ;;  %v2451_v63 = vld [vmem:[%s3448_s23] ss:$0 sm:$0xff] }
 0x643   : > { %v2561_v15 = vpop.f32.mrf.mxu1  ;;  %v2568_v16 = vpop.f32.mrf.mxu0  ;;  %v2693_v11 = vld [vmem:[%s3046_s29] sm:$0xff]  }
 0x644   : > { %v1726_v19 = vrot.slane %v1718_v13, %v3117_v40  ;;  %v1733_v20 = vrot.slane %v1719_v14, %v3117_v40  ;;  %v2452_v16 = vld [vmem:[%s718_s2] ss:$0 sm:$0xff] }
 0x645   : > { %v1669_v21 = vpop.f32.mrf.mxu1 }
 0x646   : > { %v1750_v22 = vcombine.low %v1726_v19, %v1742_v17  ;;  %v1751_v24 = vcombine.high %v1726_v19, %v1742_v17  ;;  %v1766_v25 = vcombine.low %v1733_v20, %v1749_v18  ;;  %v1767_v26 = vcombine.high %v1733_v20, %v1749_v18 }
 0x647   : > { %v2562_v31 = vpop.f32.mrf.mxu1 }
 0x648   : > { %v1758_v32 = vrot.slane %v1750_v22, %v3127_v50  ;;  %v1765_v33 = vrot.slane %v1751_v24, %v3127_v50  ;;  %v1774_v34 = vrot.slane %v1766_v25, %v3127_v50  ;;  %v1781_v35 = vrot.slane %v1767_v26, %v3127_v50  ;;  %v2694_v22 = vld [vmem:[%s3056_s25 + $0x38] sm:$0xff]   ;;  %v2695_v24 = vld [vmem:[%s3056_s25 + $0x30] sm:$0xff]   ;;  %v2696_v25 = vld [vmem:[%s3056_s25 + $0x28] sm:$0xff]  }
 0x649   : > { %v2697_v26 = vld [vmem:[%s3056_s25 + $0x20] sm:$0xff]   ;;  %v2699_v31 = vld [vmem:[%s3056_s25 + $0x10] sm:$0xff]  }
 0x64a   : > { %v1786_v36 = vcombine.low %v1758_v32, %v1765_v33  ;;  %v2446_v37 = vcombine.high %v1758_v32, %v1765_v33  ;;  %v1802_v38 = vcombine.low %v1774_v34, %v1781_v35  ;;  %v2447_v39 = vcombine.high %v1774_v34, %v1781_v35  ;;  %v2700_v32 = vld [vmem:[%s3056_s25 + $0x8] sm:$0xff]   ;;  %v2701_v33 = vld [vmem:[%s3056_s25] sm:$0xff]  }
 0x64b   : > { %v2454_v34 = vld [vmem:[%s729_s20] ss:$0 sm:$0xff]  ;;  %s3450_s20 = sld [smem:[#allocation9_spill]] }
 0x64c   : > { %v1793_v42 = vrot.slane %v1786_v36, %v3117_v40  ;;  %v1801_v43 = vrot.slane %v2446_v37, %v3117_v40  ;;  %v1809_v44 = vrot.slane %v1802_v38, %v3117_v40  ;;  %v1817_v45 = vrot.slane %v2447_v39, %v3117_v40 }
 0x64e   : > { %v1819_v47 = vcombine.high %v1793_v42, %v1801_v43  ;;  %v1835_v49 = vcombine.high %v1809_v44, %v1817_v45  ;;  %v1818_v23 = vcombine.low %v1793_v42, %v1801_v43  ;;  %v1834_v51 = vcombine.low %v1809_v44, %v1817_v45 }
 0x650   : > { %v1833_v52 = vrot.slane %v1819_v47, %v3127_v50  ;;  %v1849_v53 = vrot.slane %v1835_v49, %v3127_v50  ;;  %v1826_v54 = vrot.slane %v1818_v23, %v3127_v50  ;;  %v1842_v55 = vrot.slane %v1834_v51, %v3127_v50  ;;  %v2467_v23 = vld [vmem:[%s737_s3] ss:$0 sm:$0xff] }
 0x651   : > { %p2468_p1 = scmp.ne.s32.totalorder %s3450_s20, 1 }
 0x652   : > { %v1852_v46 = vcombine.low %v1833_v52, %v1849_v53  ;;  %v1851_v48 = vcombine.high %v1826_v54, %v1842_v55  ;;  %v1850_v57 = vcombine.low %v1826_v54, %v1842_v55  ;;  %v1853_v40 = vcombine.high %v1833_v52, %v1849_v53  ;;  %s3451_s4 = sld [smem:[#allocation26_spill]] (!%p2468_p1) }
 0x654   : > { %1859 = vrot.lane.b32.xlu1 %v1852_v46, %s2831_s30  ;;  %1855 = vrot.lane.b32.xlu0 %v1851_v48, %s2832_s19  ;;  %s3452_s19 = sld [smem:[#allocation27_spill]] (!%p2468_p1) }
 0x658   : > { %1863 = vrot.lane.b32.xlu0 %v1853_v40, %s2833_s27 }
 0x6c6   : > { %v1856_v28 = vpop.permute.xlu0 %1855  ;;  %v1860_v27 = vpop.permute.xlu1 %1859 }
 0x6c7   : > { %v1866_v29 = vsel %vm1296_vm3, %v1850_v57, %v1856_v28 }
 0x6c8   : > { %v1868_v60 = vsel %vm1867_vm5, %v1866_v29, %v1860_v27 }
 0x6ca   : > { %v1864_v59 = vpop.permute.xlu0 %1863 }
 0x6cb   : > { %v1870_v50 = vsel %vm1869_vm6, %v1868_v60, %v1864_v59 }
 0x6cc   : > { %v1871_v61 = vpack.c.bf16 %v1870_v50, %v1870_v50 }
 0x6ce   : > { %2574 = vmatmul.mubr.msk.bf16.vlgmr.msra.gmra.mxu1 %vm749_vm1, %v1871_v61 }
 0x6cf   : > { %2601 = vmatprep.mubr.msk.bf16.mxu1 %vm2823_vm2, %v2822_v9  ;;  %2586 = vmatpush3.bf16.msra.mxu1 %v2694_v22 }
 0x6d0   : > { %2587 = vmatprep.subr.bf16.mxu1 %v2822_v9 }
 0x6d3   : > { %2588 = vmatpush3.bf16.msra.mxu1 %v2695_v24 }
 0x6d4   : > { %2589 = vmatprep.subr.bf16.mxu1 %v2822_v9 }
 0x6d7   : > { %2590 = vmatpush3.bf16.msra.mxu1 %v2696_v25 }
 0x6d8   : > { %2591 = vmatprep.subr.bf16.mxu1 %v2822_v9 }
 0x6db   : > { %2592 = vmatpush3.bf16.msra.mxu1 %v2697_v26 }
 0x6dc   : > { %2593 = vmatprep.subr.bf16.mxu1 %v2822_v9 }
 0x6df   : > { %2594 = vmatpush3.bf16.msra.mxu1 %v2698_v30 }
 0x6e0   : > { %2595 = vmatprep.subr.bf16.mxu1 %v2822_v9 }
 0x6e3   : > { %2596 = vmatpush3.bf16.msra.mxu1 %v2699_v31 }
 0x6e4   : > { %2597 = vmatprep.subr.bf16.mxu1 %v2822_v9 }
 0x6e7   : > { %2598 = vmatpush3.bf16.msra.mxu1 %v2700_v32 }
 0x6e8   : > { %2599 = vmatprep.subr.bf16.mxu1 %v2822_v9 }
 0x6eb   : > { %2600 = vmatpush3.bf16.msra.mxu1 %v2701_v33 }
 0x78e   : > { %v1925_v62 = vpop.f32.mrf.mxu1 }
 0x78f   : > { %v1931_v0 = vadd.f32 %v1925_v62, %v3064_v1  ;;  %v2692_v1 = vld [vmem:[%s3046_s29 + $0x8] sm:$0xff]   ;;  %s3449_s29 = scalar_lea.vmem %s3388_s9, %s2998_s21 }
 0x790   : > { %v2575_v2 = vpop.f32.mrf.mxu1  ;;  %2578 = vmatpush3.bf16.msra.mxu0 %v2692_v1  ;;  %v2453_v18 = vld [vmem:[%s3449_s29] ss:$0 sm:$0xff] }
 0x791   : > { %v3272_v3 = vadd.f32 %v2451_v63, %v1931_v0  ;;  %2579 = vmatprep.subr.bf16.mxu0 %v2822_v9 }
 0x792   : > { %v1928_v56 = vpop.f32.mrf.mxu1 }
 0x793   : > { %v1942_v4 = vsel %vm749_vm1, %v3272_v3, 0.0 }
 0x794   : > { %1943 = vadd.xlane.f32.xlu1 %v1942_v4  ;;  %v2576_v5 = vpop.f32.mrf.mxu1  ;;  %2580 = vmatpush3.bf16.msra.mxu0 %v2693_v11 }
 0x81d   : > { %v1944_v6 = vpop.xlane.xlu1 %1943 }
 0x81e   : > { %v1945_v7 = vmul.f32 0.03125, %v1944_v6 }
 0x820   : > { %v1946_v8 = vsub.f32 %v3272_v3, %v1945_v7 }
 0x822   : > { %v1947_v58 = vmul.f32 %v1946_v8, %v1946_v8 }
 0x824   : > { %v1948_v10 = vsel %vm749_vm1, %v1947_v58, 0.0 }
 0x825   : > { %1949 = vadd.xlane.f32.xlu0 %v1948_v10 }
 0x8ae   : > { %v1950_v12 = vpop.xlane.xlu0 %1949 }
 0x8af   : > { %v1951_v13 = vmul.f32 0.03125, %v1950_v12 }
 0x8b1   : > { %v1952_v14 = vadd.f32 1e-05, %v1951_v13 }
 0x8b3   : > { %2720 = vrsqrt.f32 %v1952_v14 }
 0x8c0   : > { %v2721_v15 = vpop.eup %2720 }
 0x8c1   : > { %v1954_v17 = vmul.f32 %v2721_v15, %v1946_v8 }
 0x8c3   : > { %v1961_v19 = vmul.f32 %v2452_v16, %v1954_v17 }
 0x8c5   : > { %v1968_v20 = vadd.f32 %v2453_v18, %v1961_v19 }
 0x8c7   : > { %v1969_v21 = vpack.c.bf16 %v1968_v20, %v1968_v20 }
 0x8c9   : > { %2582 = vmatmul.mubr.msk.bf16.vlgmr.msra.gmra.mxu0 %vm749_vm1, %v1969_v21 }
 0x989   : > { %v2030_v35 = vpop.f32.mrf.mxu0 }
 0x98a   : > { %v2031_v36 = vadd.f32 %v2454_v34, %v2030_v35 }
 0x98b   : > { %v2583_v37 = vpop.f32.mrf.mxu0 }
 0x98c   : > { %v2458_v38 = vmul.f32 -1.702, %v2031_v36 }
 0x98d   : > { %v2033_v39 = vpop.f32.mrf.mxu0 }
 0x98e   : > { %v2038_v41 = vmul.f32 1.442695, %v2458_v38 }
 0x98f   : > { %v2584_v42 = vpop.f32.mrf.mxu0 }
 0x990   : > { %2722 = vpow2.f32 %v2038_v41 }
 0x99d   : > { %v2723_v43 = vpop.eup %2722 }
 0x99e   : > { %v2040_v44 = vadd.f32 1.0, %v2723_v43 }
 0x9a0   : > { %2724 = vrcp.f32 %v2040_v44 }
 0x9ad   : > { %v2725_v9 = vpop.eup %2724 }
 0x9ae   : > { %v2043_v45 = vmul.f32 %v2725_v9, %v2031_v36 }
 0x9b0   : > { %v2044_v47 = vpack.c.bf16 %v2043_v45, %v2043_v45 }
 0x9b2   : > { %2602 = vmatmul.mubr.bf16.vlgmr.msra.gmra.mxu1 %v2044_v47 }
 0xa72   : > { %v2143_v49 = vpop.f32.mrf.mxu1 }
 0xa73   : > { %v2149_v51 = vadd.f32 %v2143_v49, %v3272_v3 }
 0xa74   : > { %v2603_v52 = vpop.f32.mrf.mxu1  ;;  %2162 = sbr.rel (%p2468_p1) target bundleno = 2990 (0xbae), region = 92 }
 0xa75   : > { %v2157_v53 = vadd.f32 %v2467_v23, %v2149_v51 }
 0xa76   : > { %v2146_v54 = vpop.f32.mrf.mxu1 }
 0xa77   : > { %2158 = vst.msk [vmem:[#allocation2] sm:$0xff] %vm749_vm1, %v2157_v53 }
 0xa78   : > { %v2604_v55 = vpop.f32.mrf.mxu1 }
 0xa79   : > { %v2165_v46 = vsel %vm749_vm1, %v2157_v53, 0.0  ;;  %v2469_v61 = vld [vmem:[%s3451_s4] ss:$0 sm:$0xff] }
 0xa7a   : > { %2166 = vadd.xlane.f32.xlu0 %v2165_v46  ;;  %v2470_v63 = vld [vmem:[%s3452_s19] ss:$0 sm:$0xff] }
 0xb03   : > { %v2167_v48 = vpop.xlane.xlu0 %2166 }
 0xb04   : > { %v2168_v57 = vmul.f32 0.03125, %v2167_v48 }
 0xb06   : > { %v2169_v40 = vsub.f32 %v2157_v53, %v2168_v57 }
 0xb08   : > { %v2170_v28 = vmul.f32 %v2169_v40, %v2169_v40 }
 0xb0a   : > { %v2171_v27 = vsel %vm749_vm1, %v2170_v28, 0.0 }
 0xb0b   : > { %2172 = vadd.xlane.f32.xlu0 %v2171_v27 }
 0xb94   : > { %v2173_v29 = vpop.xlane.xlu0 %2172 }
 0xb95   : > { %v2174_v59 = vmul.f32 0.03125, %v2173_v29 }
 0xb97   : > { %v2175_v60 = vadd.f32 1e-05, %v2174_v59 }
 0xb99   : > { %2726 = vrsqrt.f32 %v2175_v60 }
 0xba6   : > { %v2727_v50 = vpop.eup %2726 }
 0xba7   : > { %v2177_v62 = vmul.f32 %v2727_v50, %v2169_v40 }
 0xba9   : > { %v2184_v0 = vmul.f32 %v2469_v61, %v2177_v62 }
 0xbab   : > { %v2191_v2 = vadd.f32 %v2470_v63, %v2184_v0 }
 0xbad   : > { %2192 = vst.msk [vmem:[%s685_s24] sm:$0xff] %vm749_vm1, %v2191_v2 }
 0xbae PF: > { %s3453_s27 = sld [smem:[#allocation10_spill]]  ;;  %s2207_s2 = sshll.u32 %s685_s24, 4  ;;  %s2208_s2 = int_to_ptr.vmem [resolvable:$true] %s2207_s2 }
 0xbaf   : > { %s3454_s0 = sld [smem:[#allocation7_spill]]  ;;  %s2728_s15 = scalar_lea.vmem %s2208_s2, 128 }
 0xbb0   : > { %s3456_s22 = sld [smem:[#allocation28_spill]]  ;;  %p2729_p2 = scmp.ne.s32.totalorder %s2208_s2, %s2728_s15 }
 0xbb1   : > { %s2834_s20 = smov [#allocation3]  }
 0xbb2   : > { %p2730_p4 = pnand %p2729_p2, %p2969_p3  ;;  %s2732_s21 = sshll.u32 %s2834_s20, 4  ;;  %s2733_s21 = int_to_ptr.vmem [resolvable:$false] %s2732_s21 }
 0xbb3   : > { %s2734_s3 = scalar_lea.vmem %s2733_s21, 256  ;;  %p2735_p6 = scmp.lt.s32.totalorder %s2208_s2, %s2733_s21 }
 0xbb4   : > { %s2472_s23 = sshll.u32 %s3453_s27, 7  ;;  %p2731_p5 = pneg %p2730_p4 }
 0xbb5   : > { %s3458_s14 = sand.u32 1, %s3454_s0   ;;  %p2736_p7 = scmp.lt.s32.totalorder %s2734_s3, %s2728_s15 }
 0xbb6   : > { %s3457_s18 = smov %s3456_s22  ;;  %s2205_s29 = scalar_lea.hbm %s3456_s22, %s2472_s23 }
 0xbb7   : > { %s2194_s25 = scalar_lea.sflag [#allocation4], %s3458_s14  ;;  %p2737_p8 = por %p2736_p7, %p2735_p6 }
 0xbb9   : > { %p2738_p10 = pnand %p2737_p8, %p2731_p5 }
 0xbbb   : > { %2741 = shalt.err (!%p2738_p10)
}
 0xbbc   : > { %s2742_s4 = scalar_lea.hbm %s2205_s29, 128  ;;  %s2746_s16 = scalar_lea.hbm %s3457_s18, 256 }
 0xbbd   : > { %p2743_p11 = scmp.ne.s32.totalorder %s2205_s29, %s2742_s4  ;;  %p2747_p0 = scmp.lt.s32.totalorder %s2205_s29, %s3457_s18 }
 0xbbe   : > { %p2748_p1 = scmp.lt.s32.totalorder %s2746_s16, %s2742_s4 }
 0xbbf   : > { %p2744_p12 = pnand %p2743_p11, %p2969_p3 }
 0xbc0   : > { %p2749_p2 = por %p2748_p1, %p2747_p0 }
 0xbc1   : > { %p2745_p13 = pneg %p2744_p12 }
 0xbc3   : > { %p2750_p4 = pnand %p2749_p2, %p2745_p13 }
 0xbc5   : > { %2753 = shalt.err (!%p2750_p4)
}
 0xbc6   : > { %2605 = dma.vmem_to_hbm [thread:$0]  (%p2969_p3), %s2208_s2, 128, %s2205_s29, %s2194_s25  }
 0xbc7 PF: > { %s3459_s27 = sld [smem:[#allocation13_spill]] }
 0xbc8   : > { %s3460_s0 = sld [smem:[#allocation6_spill]] }
 0xbcd   : > { %p2611_p5 = scmp.ge.s32.totalorder %s3459_s27, 2 }
 0xbce   : > { %s2219_s1 = sand.u32 1, %s3460_s0  }
 0xbcf   : > { %p2608_p6 = pnand %p2611_p5, %p2979_p9  ;;  %s2220_s28 = scalar_lea.sflag [#allocation4], %s2219_s1 }
 0xbd1   : > { %p2609_p7 = pneg %p2608_p6 }
 0xbd3   : > { %2787 = dma.done.wait (%p2609_p7), %s2220_s28, 128  }
 0xbd4   : > { %2789 = vsyncadd (%p2609_p7), %s2220_s28, 4294967168  ;;  %s29_s28 = sadd.s32 1, %s3459_s27   ;;  %s3462_s21 = sld [smem:[#allocation7_spill]] }
 0xbd5   : > { %p26_p8 = scmp.ge.s32.totalorder %s29_s28, 6   ;;  %s3463_s22 = sld [smem:[#allocation8_spill]] }
 0xbd6   : > { %s3464_s23 = sld [smem:[#allocation18_spill]] }
 0xbd7   : > { %s3465_s24 = sld [smem:[#allocation11_spill]]  ;;  %28 = sbr.rel (!%p26_p8) target bundleno = 14 (0xe), region = 166 }
 0xbd8   : > { %s3466_s25 = sld [smem:[#allocation12_spill]] }
 0xbd9   : > { %s3467_s26 = sld [smem:[#allocation14_spill]] }
 0xbda   : > { %s3468_s27 = sld [smem:[#allocation16_spill]] }
 0xbdc   :  { %2225 = vsyncpa [#allocation4], 1 }
 0xbdd   :  { %2227 = vsyncpa [#allocation4 + $0x1], 1 }

</bundles_post_ra>
